<compile_context>
chip_gen: v5e
topology: v5e:2x2
jax: 0.10.0
libtpu: 0.0.40
codegen_flags: <defaults>
</compile_context>

<pallas_src>
import functools

import jax
import jax.numpy as jnp
from jax.experimental import pallas as pl
from jax.experimental.pallas import tpu as pltpu

EPS = 1e-3


def _fused_kernel(x_ref, params_ref, w_ref, o_ref, *, n_rows, w_dim):
    x = x_ref[...]                                   # (R, C) f32, lane-dense C
    inv_r = 1.0 / n_rows

    p = params_ref[...]                              # (4, C): g1, b1, g2, b2
    g1, b1 = p[0:1, :], p[1:2, :]
    g2, b2 = p[2:3, :], p[3:4, :]

    # ---- BatchNorm #1 (batch stats) folded to scale/shift, then ReLU ----
    m1 = jnp.sum(x, axis=0, keepdims=True) * inv_r                  # (1, C)
    v1 = jnp.sum(x * x, axis=0, keepdims=True) * inv_r - m1 * m1    # biased var
    v1 = jnp.maximum(v1, 0.0)                                       # guard cancellation
    scale1 = g1 * jax.lax.rsqrt(v1 + EPS)
    shift1 = b1 - m1 * scale1
    a = jnp.maximum(x * scale1 + shift1, 0.0)                       # (R, C)

    # ---- W-boundary (zero padding) masks, generated in-kernel (no DMA) ----
    w_idx = jax.lax.broadcasted_iota(jnp.int32, (n_rows, 1), 0) % w_dim
    mprev = (w_idx != 0).astype(jnp.float32)                        # (R, 1)
    mnext = (w_idx != w_dim - 1).astype(jnp.float32)                # (R, 1)

    # ---- Conv2d (1,3), stride 1, padding (0,1), no bias: one fused matmul ----
    # Row-shift by -1/+1; the (R,1) masks zero the rows whose shift would cross
    # a W-row (or batch/h) boundary -- exactly the zero padding along W.
    # NOTE: pltpu.roll would co-issue on the XLU, but sublane rotation needs an
    # 8-aligned dim and R=25 is unaligned, so keep the masked concat shifts.
    a_prev = jnp.concatenate([a[:1], a[:-1]], axis=0) * mprev
    a_next = jnp.concatenate([a[1:], a[-1:]], axis=0) * mnext
    a3 = jnp.concatenate([a_prev, a, a_next], axis=1)               # (R, 3C)
    # Single K=3*Cin matmul; MXU accumulates all three taps internally.
    # (bf16 operands would be cheaper but change numerics vs the f32 reference.)
    y = jnp.dot(a3, w_ref[...], preferred_element_type=jnp.float32)  # (R, Cout)

    # ---- BatchNorm #2 (batch stats) folded to scale/shift ----
    m2 = jnp.sum(y, axis=0, keepdims=True) * inv_r
    v2 = jnp.sum(y * y, axis=0, keepdims=True) * inv_r - m2 * m2
    v2 = jnp.maximum(v2, 0.0)
    scale2 = g2 * jax.lax.rsqrt(v2 + EPS)
    shift2 = b2 - m2 * scale2
    o_ref[...] = y * scale2 + shift2


def prepare_fused_inputs(gamma1, beta1, conv_weight, gamma2, beta2):
    """Per-module constants: compute ONCE, reuse for every forward call."""
    C = gamma1.shape[0]
    Cout = conv_weight.shape[0]
    # (4, C) stacked BN affine params -> a single tiny DMA.
    params = jnp.stack([gamma1, beta1, gamma2, beta2], axis=0).astype(jnp.float32)
    # (Cout, Cin, 1, 3) -> (3, Cin, Cout) -> (3*Cin, Cout): row k*Cin + i is
    # kernel-w tap k, input channel i, matching the [a_prev | a | a_next]
    # channel-concatenated matmul operand.
    w_fused = jnp.transpose(conv_weight[:, :, 0, :], (2, 1, 0)).reshape(3 * C, Cout)
    return params, w_fused


@jax.jit
def bn_relu_conv_bn(x_nchw, params, w_fused):
    """x_nchw: (N, Cin, H, W) f32; params: (4, Cin); w_fused: (3*Cin, Cout)."""
    N, C, H, Wd = x_nchw.shape
    Cout = w_fused.shape[1]
    R = N * H * Wd

    # NCHW -> (R, C) channels-last slab (rows ordered (n, h, w)).
    # TODO(synk): keep NHWC end-to-end in the surrounding model to drop this.
    x_rows = jnp.transpose(x_nchw, (0, 2, 3, 1)).reshape(R, C)

    kernel = functools.partial(_fused_kernel, n_rows=R, w_dim=Wd)
    out_rows = pl.pallas_call(
        kernel,
        out_shape=jax.ShapeDtypeStruct((R, Cout), jnp.float32),
        in_specs=[pl.BlockSpec(memory_space=pltpu.MemorySpace.VMEM)] * 3,
        out_specs=pl.BlockSpec(memory_space=pltpu.MemorySpace.VMEM),
    )(x_rows, params, w_fused)

    # (R, Cout) -> NCHW to match the torch interface.
    return jnp.transpose(out_rows.reshape(N, H, Wd, Cout), (0, 3, 1, 2))


def _reference(x, g1, b1, w, g2, b2):
    """Pure-JAX reference mirroring the PyTorch training-mode forward."""
    def bn(t, g, b):
        m = jnp.mean(t, axis=(0, 2, 3), keepdims=True)
        v = jnp.mean((t - m) ** 2, axis=(0, 2, 3), keepdims=True)
        return (t - m) * jax.lax.rsqrt(v + EPS) * g.reshape(1, -1, 1, 1) \
            + b.reshape(1, -1, 1, 1)
    a = jnp.maximum(bn(x, g1, b1), 0.0)
    y = jax.lax.conv_general_dilated(
        a, w, window_strides=(1, 1), padding=((0, 0), (1, 1)),
        dimension_numbers=("NCHW", "OIHW", "NCHW"))
    return bn(y, g2, b2)


if __name__ == "__main__":
    key = jax.random.PRNGKey(0)
    kx, kw = jax.random.split(key, 2)

    # Shapes implied by the module: x265 = randn(1, 384, 5, 5)
    N, C, H, Wd = 1, 384, 5, 5
    x = jax.random.normal(kx, (N, C, H, Wd), dtype=jnp.float32)

    # torch BatchNorm2d defaults: weight=1, bias=0.
    gamma1 = jnp.ones((C,), jnp.float32)
    beta1 = jnp.zeros((C,), jnp.float32)
    conv_w = 0.02 * jax.random.normal(kw, (C, C, 1, 3), dtype=jnp.float32)
    gamma2 = jnp.ones((C,), jnp.float32)
    beta2 = jnp.zeros((C,), jnp.float32)

    # One-time weight/param repack (hoisted out of the per-call hot path).
    params, w_fused = prepare_fused_inputs(gamma1, beta1, conv_w, gamma2, beta2)
    params = jax.block_until_ready(params)
    w_fused = jax.block_until_ready(w_fused)

    out = bn_relu_conv_bn(x, params, w_fused)
    out = jax.block_until_ready(out)
    assert out.shape == (N, C, H, Wd) and out.dtype == jnp.float32

    ref = jax.block_until_ready(_reference(x, gamma1, beta1, conv_w, gamma2, beta2))
    max_err = float(jnp.max(jnp.abs(out - ref)))
    assert max_err < 2e-3, f"max abs error vs reference: {max_err}"

    print("KERNEL_OK")
</pallas_src>

<mosaic_0001>
module attributes {stable_mosaic.version = 11 : i64} {
  func.func @_fused_kernel(%arg0: memref<25x384xf32, #tpu.memory_space<vmem>>, %arg1: memref<4x384xf32, #tpu.memory_space<vmem>>, %arg2: memref<1152x384xf32, #tpu.memory_space<vmem>>, %arg3: memref<25x384xf32, #tpu.memory_space<vmem>>) attributes {dimension_semantics = [], scalar_prefetch = 0 : i64, scratch_operands = 0 : i64, tpu.core_type = #tpu.core_type<tc>} {
    %c0 = arith.constant 0 : index
    %c0_0 = arith.constant 0 : index
    %0 = vector.load %arg0[%c0, %c0_0] : memref<25x384xf32, #tpu.memory_space<vmem>>, vector<25x384xf32>
    %c0_1 = arith.constant 0 : index
    %c0_2 = arith.constant 0 : index
    %1 = vector.load %arg1[%c0_1, %c0_2] : memref<4x384xf32, #tpu.memory_space<vmem>>, vector<4x384xf32>
    %2 = vector.extract_strided_slice %1 {offsets = [0, 0], sizes = [1, 384], strides = [1, 1]} : vector<4x384xf32> to vector<1x384xf32>
    %3 = vector.extract_strided_slice %1 {offsets = [1, 0], sizes = [1, 384], strides = [1, 1]} : vector<4x384xf32> to vector<1x384xf32>
    %4 = vector.extract_strided_slice %1 {offsets = [2, 0], sizes = [1, 384], strides = [1, 1]} : vector<4x384xf32> to vector<1x384xf32>
    %5 = vector.extract_strided_slice %1 {offsets = [3, 0], sizes = [1, 384], strides = [1, 1]} : vector<4x384xf32> to vector<1x384xf32>
    %cst = arith.constant dense<0.000000e+00> : vector<384xf32>
    %6 = vector.multi_reduction <add>, %0, %cst [0] : vector<25x384xf32> to vector<384xf32>
    %7 = vector.shape_cast %6 : vector<384xf32> to vector<1x384xf32>
    %cst_3 = arith.constant 4.000000e-02 : f32
    %8 = vector.broadcast %cst_3 : f32 to vector<1x384xf32>
    %9 = arith.mulf %7, %8 : vector<1x384xf32>
    %10 = arith.mulf %0, %0 : vector<25x384xf32>
    %cst_4 = arith.constant dense<0.000000e+00> : vector<384xf32>
    %11 = vector.multi_reduction <add>, %10, %cst_4 [0] : vector<25x384xf32> to vector<384xf32>
    %12 = vector.shape_cast %11 : vector<384xf32> to vector<1x384xf32>
    %cst_5 = arith.constant 4.000000e-02 : f32
    %13 = vector.broadcast %cst_5 : f32 to vector<1x384xf32>
    %14 = arith.mulf %12, %13 : vector<1x384xf32>
    %15 = arith.mulf %9, %9 : vector<1x384xf32>
    %16 = arith.subf %14, %15 : vector<1x384xf32>
    %cst_6 = arith.constant 0.000000e+00 : f32
    %17 = vector.broadcast %cst_6 : f32 to vector<1x384xf32>
    %18 = arith.maximumf %16, %17 : vector<1x384xf32>
    %cst_7 = arith.constant 1.000000e-03 : f32
    %19 = vector.broadcast %cst_7 : f32 to vector<1x384xf32>
    %20 = arith.addf %18, %19 : vector<1x384xf32>
    %21 = math.rsqrt %20 : vector<1x384xf32>
    %22 = arith.mulf %2, %21 : vector<1x384xf32>
    %23 = arith.mulf %9, %22 : vector<1x384xf32>
    %24 = arith.subf %3, %23 : vector<1x384xf32>
    %25 = vector.broadcast %22 : vector<1x384xf32> to vector<25x384xf32>
    %26 = arith.mulf %0, %25 : vector<25x384xf32>
    %27 = vector.broadcast %24 : vector<1x384xf32> to vector<25x384xf32>
    %28 = arith.addf %26, %27 : vector<25x384xf32>
    %cst_8 = arith.constant 0.000000e+00 : f32
    %29 = vector.broadcast %cst_8 : f32 to vector<25x384xf32>
    %30 = arith.maximumf %28, %29 : vector<25x384xf32>
    %31 = tpu.iota {dimensions = array<i32: 0>} : vector<25x1xi32>
    %c5_i32 = arith.constant 5 : i32
    %c0_i32 = arith.constant 0 : i32
    %32 = arith.cmpi eq, %c5_i32, %c0_i32 : i32
    %c1_i32 = arith.constant 1 : i32
    %33 = arith.select %32, %c1_i32, %c5_i32 : i32
    %34 = vector.broadcast %33 : i32 to vector<25x1xi32>
    %35 = arith.remsi %31, %34 : vector<25x1xi32>
    %c0_i32_9 = arith.constant 0 : i32
    %36 = vector.broadcast %c0_i32_9 : i32 to vector<25x1xi32>
    %37 = arith.cmpi ne, %35, %36 : vector<25x1xi32>
    %c0_i32_10 = arith.constant 0 : i32
    %38 = vector.broadcast %c0_i32_10 : i32 to vector<25x1xi32>
    %39 = arith.cmpi slt, %35, %38 : vector<25x1xi32>
    %c0_i32_11 = arith.constant 0 : i32
    %40 = arith.cmpi slt, %33, %c0_i32_11 : i32
    %41 = vector.broadcast %40 : i1 to vector<25x1xi1>
    %42 = vector.broadcast %41 : vector<25x1xi1> to vector<25x1xi1>
    %43 = arith.xori %39, %42 : vector<25x1xi1>
    %44 = arith.andi %43, %37 : vector<25x1xi1>
    %45 = vector.broadcast %33 : i32 to vector<25x1xi32>
    %46 = arith.addi %35, %45 : vector<25x1xi32>
    %47 = arith.select %44, %46, %35 : vector<25x1xi1>, vector<25x1xi32>
    %c0_i32_12 = arith.constant 0 : i32
    %48 = vector.broadcast %c0_i32_12 : i32 to vector<25x1xi32>
    %49 = arith.cmpi ne, %47, %48 : vector<25x1xi32>
    %50 = arith.extui %49 : vector<25x1xi1> to vector<25x1xi32>
    %51 = arith.sitofp %50 : vector<25x1xi32> to vector<25x1xf32>
    %c4_i32 = arith.constant 4 : i32
    %52 = vector.broadcast %c4_i32 : i32 to vector<25x1xi32>
    %53 = arith.cmpi ne, %47, %52 : vector<25x1xi32>
    %54 = arith.extui %53 : vector<25x1xi1> to vector<25x1xi32>
    %55 = arith.sitofp %54 : vector<25x1xi32> to vector<25x1xf32>
    %56 = vector.extract_strided_slice %30 {offsets = [0, 0], sizes = [1, 384], strides = [1, 1]} : vector<25x384xf32> to vector<1x384xf32>
    %57 = vector.extract_strided_slice %30 {offsets = [0, 0], sizes = [24, 384], strides = [1, 1]} : vector<25x384xf32> to vector<24x384xf32>
    %58 = tpu.concatenate %56, %57 in 0 : vector<1x384xf32>, vector<24x384xf32> -> vector<25x384xf32>
    %59 = vector.broadcast %51 : vector<25x1xf32> to vector<25x384xf32>
    %60 = arith.mulf %58, %59 : vector<25x384xf32>
    %61 = vector.extract_strided_slice %30 {offsets = [1, 0], sizes = [24, 384], strides = [1, 1]} : vector<25x384xf32> to vector<24x384xf32>
    %62 = vector.extract_strided_slice %30 {offsets = [24, 0], sizes = [1, 384], strides = [1, 1]} : vector<25x384xf32> to vector<1x384xf32>
    %63 = tpu.concatenate %61, %62 in 0 : vector<24x384xf32>, vector<1x384xf32> -> vector<25x384xf32>
    %64 = vector.broadcast %55 : vector<25x1xf32> to vector<25x384xf32>
    %65 = arith.mulf %63, %64 : vector<25x384xf32>
    %66 = tpu.concatenate %60, %30, %65 in 1 : vector<25x384xf32>, vector<25x384xf32>, vector<25x384xf32> -> vector<25x1152xf32>
    %c0_13 = arith.constant 0 : index
    %c0_14 = arith.constant 0 : index
    %67 = vector.load %arg2[%c0_13, %c0_14] : memref<1152x384xf32, #tpu.memory_space<vmem>>, vector<1152x384xf32>
    %cst_15 = arith.constant dense<0.000000e+00> : vector<25x384xf32>
    %68 = tpu.matmul %66, %67, %cst_15 {dimension_numbers = #tpu.dot_dimension_numbers<[1], [0], [0], [1], [0, 0, 1, 1], [], []>} : vector<25x1152xf32>, vector<1152x384xf32>, vector<25x384xf32> -> vector<25x384xf32>
    %cst_16 = arith.constant dense<0.000000e+00> : vector<384xf32>
    %69 = vector.multi_reduction <add>, %68, %cst_16 [0] : vector<25x384xf32> to vector<384xf32>
    %70 = vector.shape_cast %69 : vector<384xf32> to vector<1x384xf32>
    %cst_17 = arith.constant 4.000000e-02 : f32
    %71 = vector.broadcast %cst_17 : f32 to vector<1x384xf32>
    %72 = arith.mulf %70, %71 : vector<1x384xf32>
    %73 = arith.mulf %68, %68 : vector<25x384xf32>
    %cst_18 = arith.constant dense<0.000000e+00> : vector<384xf32>
    %74 = vector.multi_reduction <add>, %73, %cst_18 [0] : vector<25x384xf32> to vector<384xf32>
    %75 = vector.shape_cast %74 : vector<384xf32> to vector<1x384xf32>
    %cst_19 = arith.constant 4.000000e-02 : f32
    %76 = vector.broadcast %cst_19 : f32 to vector<1x384xf32>
    %77 = arith.mulf %75, %76 : vector<1x384xf32>
    %78 = arith.mulf %72, %72 : vector<1x384xf32>
    %79 = arith.subf %77, %78 : vector<1x384xf32>
    %cst_20 = arith.constant 0.000000e+00 : f32
    %80 = vector.broadcast %cst_20 : f32 to vector<1x384xf32>
    %81 = arith.maximumf %79, %80 : vector<1x384xf32>
    %cst_21 = arith.constant 1.000000e-03 : f32
    %82 = vector.broadcast %cst_21 : f32 to vector<1x384xf32>
    %83 = arith.addf %81, %82 : vector<1x384xf32>
    %84 = math.rsqrt %83 : vector<1x384xf32>
    %85 = arith.mulf %4, %84 : vector<1x384xf32>
    %86 = arith.mulf %72, %85 : vector<1x384xf32>
    %87 = arith.subf %5, %86 : vector<1x384xf32>
    %88 = vector.broadcast %85 : vector<1x384xf32> to vector<25x384xf32>
    %89 = arith.mulf %68, %88 : vector<25x384xf32>
    %90 = vector.broadcast %87 : vector<1x384xf32> to vector<25x384xf32>
    %91 = arith.addf %89, %90 : vector<25x384xf32>
    %c0_22 = arith.constant 0 : index
    %c0_23 = arith.constant 0 : index
    %92 = vector.load %arg3[%c0_22, %c0_23] : memref<25x384xf32, #tpu.memory_space<vmem>>, vector<25x384xf32>
    tpu.vector_store %arg3[%c0_22, %c0_23], %91 {strides = array<i32>} : memref<25x384xf32, #tpu.memory_space<vmem>>, vector<25x384xf32>,
    return
  }
}

</mosaic_0001>

<bundles_post_ra>
// kernel: bn_relu_conv_bn.1
= control target key start
LH: loop header
LB: loop body
LE: loop exit
PB: predicated region body
PF: predicated region fallthrough
CT: control target
= control target key end

     0   :  { %8 = vsyncpa [#allocation3], 0  ;;  %s2918_s0 = inlined_call_operand.vmem [shape: f32[25,384], index: 0, kind: input, shape index: {}]   ;;  %s2919_s1 = inlined_call_operand.hbm [shape: f32[4,384], index: 1, kind: input, shape index: {}]   ;;  %s2920_s2 = inlined_call_operand.hbm [shape: f32[1152,384], index: 2, kind: input, shape index: {}]   ;;  %s2921_s3 = inlined_call_operand.vmem [shape: f32[25,384], index: 3, kind: output, shape index: {}]  }
   0x1   :  { %s17_s14 = sshll.u32 %s2919_s1, 4  ;;  %s18_s14 = int_to_ptr.hbm [resolvable:$true] %s17_s14 }
   0x2   :  { %9 = vsyncpa [#allocation5], 0  ;;  %s2043_s15 = smov [#allocation2]   ;;  %s27_s19 = sshll.u32 %s2920_s2, 4  ;;  %s28_s19 = int_to_ptr.hbm [resolvable:$true] %s27_s19 }
   0x3   :  { %s19_s16 = sshll.u32 %s2043_s15, 4  ;;  %s2044_s20 = smov [#allocation4]   ;;  %s20_s16 = int_to_ptr.vmem [resolvable:$true] %s19_s16 }
   0x4   :  { %22 = dma.hbm_to_vmem [thread:$0]  %s18_s14, 192, %s20_s16, [#allocation3]  }
   0x5   :  { %s29_s21 = sshll.u32 %s2044_s20, 4  ;;  %s2045_s22 = smov 384   ;;  %s30_s21 = int_to_ptr.vmem [resolvable:$true] %s29_s21 }
   0x6   :  { %s2046_s23 = smov 24  }
   0x7   :  { %35 = dma.hbm_to_vmem [thread:$0]  %s28_s19, 55296, %s30_s21, [#allocation5], %s2045_s22, %s2045_s22, %s2046_s23  }
   0x8   :  { %2039 = dma.done.wait [#allocation3], 192  }
   0x9   :  { %2040 = vsyncadd [#allocation3], 4294967104 }
   0xa   :  { %2041 = dma.done.wait [#allocation5], 55296  }
   0xb   :  { %2042 = vsyncadd [#allocation5], 4294912000  ;;  %v662_v0 = vld [vmem:[#allocation4 + $0x468] sm:$0xff]  ;;  %v659_v2 = vld [vmem:[#allocation4 + $0x450] sm:$0xff]  ;;  %vm60_vm0 = vcmask 1040384  }
   0xc   :  { %v710_v1 = vld [vmem:[#allocation4 + $0x5e8] sm:$0xff]  ;;  %1011 = vmatpush.msra.mxu2 %v662_v0  ;;  %v707_v3 = vld [vmem:[#allocation4 + $0x5d0] sm:$0xff]  ;;  %v656_v4 = vld [vmem:[#allocation4 + $0x438] sm:$0xff] }
   0xd   :  { %1040 = vmatpush.msra.mxu3 %v710_v1  ;;  %v704_v5 = vld [vmem:[#allocation4 + $0x5b8] sm:$0xff]  ;;  %v566_v6 = vld [vmem:[#allocation4 + $0x168] sm:$0xff]  ;;  %v563_v8 = vld [vmem:[#allocation4 + $0x150] sm:$0xff] }
   0xe   :  { %v614_v7 = vld [vmem:[#allocation4 + $0x2e8] sm:$0xff]  ;;  %1012 = vmatpush.msra.mxu2 %v659_v2  ;;  %v611_v9 = vld [vmem:[#allocation4 + $0x2d0] sm:$0xff]  ;;  %953 = vmatpush.msra.mxu0 %v566_v6  ;;  %v653_v10 = vld [vmem:[#allocation4 + $0x420] sm:$0xff] }
   0xf   :  { %1041 = vmatpush.msra.mxu3 %v707_v3  ;;  %982 = vmatpush.msra.mxu1 %v614_v7  ;;  %v701_v11 = vld [vmem:[#allocation4 + $0x5a0] sm:$0xff]  ;;  %v560_v12 = vld [vmem:[#allocation4 + $0x138] sm:$0xff]  ;;  %v650_v14 = vld [vmem:[#allocation4 + $0x408] sm:$0xff] }
  0x10   :  { %1013 = vmatpush.msra.mxu2 %v656_v4  ;;  %v608_v13 = vld [vmem:[#allocation4 + $0x2b8] sm:$0xff]  ;;  %954 = vmatpush.msra.mxu0 %v563_v8  ;;  %v698_v15 = vld [vmem:[#allocation4 + $0x588] sm:$0xff]  ;;  %v557_v16 = vld [vmem:[#allocation4 + $0x120] sm:$0xff] }
  0x11   :  { %1042 = vmatpush.msra.mxu3 %v704_v5  ;;  %983 = vmatpush.msra.mxu1 %v611_v9  ;;  %v605_v17 = vld [vmem:[#allocation4 + $0x2a0] sm:$0xff]  ;;  %v647_v18 = vld [vmem:[#allocation4 + $0x3f0] sm:$0xff]  ;;  %v554_v20 = vld [vmem:[#allocation4 + $0x108] sm:$0xff] }
  0x12   :  { %1014 = vmatpush.msra.mxu2 %v653_v10  ;;  %955 = vmatpush.msra.mxu0 %v560_v12  ;;  %v695_v19 = vld [vmem:[#allocation4 + $0x570] sm:$0xff]  ;;  %v602_v21 = vld [vmem:[#allocation4 + $0x288] sm:$0xff]  ;;  %v644_v22 = vld [vmem:[#allocation4 + $0x3d8] sm:$0xff] }
  0x13   :  { %1043 = vmatpush.msra.mxu3 %v701_v11  ;;  %984 = vmatpush.msra.mxu1 %v608_v13  ;;  %v692_v23 = vld [vmem:[#allocation4 + $0x558] sm:$0xff]  ;;  %v551_v24 = vld [vmem:[#allocation4 + $0xf0] sm:$0xff]  ;;  %v641_v26 = vld [vmem:[#allocation4 + $0x3c0] sm:$0xff] }
  0x14   :  { %1015 = vmatpush.msra.mxu2 %v650_v14  ;;  %956 = vmatpush.msra.mxu0 %v557_v16  ;;  %v599_v25 = vld [vmem:[#allocation4 + $0x270] sm:$0xff]  ;;  %v689_v27 = vld [vmem:[#allocation4 + $0x540] sm:$0xff]  ;;  %v548_v28 = vld [vmem:[#allocation4 + $0xd8] sm:$0xff] }
  0x15   :  { %1044 = vmatpush.msra.mxu3 %v698_v15  ;;  %985 = vmatpush.msra.mxu1 %v605_v17  ;;  %v596_v29 = vld [vmem:[#allocation4 + $0x258] sm:$0xff]  ;;  %v638_v30 = vld [vmem:[#allocation4 + $0x3a8] sm:$0xff]  ;;  %v545_v32 = vld [vmem:[#allocation4 + $0xc0] sm:$0xff]  ;;  %v259_v15 = vlaneseq }
  0x16   :  { %1016 = vmatpush.msra.mxu2 %v647_v18  ;;  %957 = vmatpush.msra.mxu0 %v554_v20  ;;  %v686_v31 = vld [vmem:[#allocation4 + $0x528] sm:$0xff]  ;;  %v593_v33 = vld [vmem:[#allocation4 + $0x240] sm:$0xff]  ;;  %v635_v34 = vld [vmem:[#allocation4 + $0x390] sm:$0xff] }
  0x17   :  { %1045 = vmatpush.msra.mxu3 %v695_v19  ;;  %986 = vmatpush.msra.mxu1 %v602_v21  ;;  %v683_v35 = vld [vmem:[#allocation4 + $0x510] sm:$0xff]  ;;  %v632_v36 = vld [vmem:[#allocation4 + $0x378] sm:$0xff]  ;;  %v542_v38 = vld [vmem:[#allocation4 + $0xa8] sm:$0xff] }
  0x18   :  { %1017 = vmatpush.msra.mxu2 %v644_v22  ;;  %958 = vmatpush.msra.mxu0 %v551_v24  ;;  %v680_v37 = vld [vmem:[#allocation4 + $0x4f8] sm:$0xff]  ;;  %v590_v39 = vld [vmem:[#allocation4 + $0x228] sm:$0xff]  ;;  %v629_v40 = vld [vmem:[#allocation4 + $0x360] sm:$0xff] }
  0x19   :  { %1046 = vmatpush.msra.mxu3 %v692_v23  ;;  %987 = vmatpush.msra.mxu1 %v599_v25  ;;  %v677_v41 = vld [vmem:[#allocation4 + $0x4e0] sm:$0xff]  ;;  %v539_v42 = vld [vmem:[#allocation4 + $0x90] sm:$0xff]  ;;  %v536_v44 = vld [vmem:[#allocation4 + $0x78] sm:$0xff] }
  0x1a   :  { %1018 = vmatpush.msra.mxu2 %v641_v26  ;;  %959 = vmatpush.msra.mxu0 %v548_v28  ;;  %v587_v43 = vld [vmem:[#allocation4 + $0x210] sm:$0xff]  ;;  %v2078_v45 = vld [vmem:[%s2918_s0 + $0x10] sm:$0xff]  ;;  %v2083_v46 = vld [vmem:[%s2918_s0 + $0x28] sm:$0xff] }
  0x1b   :  { %1047 = vmatpush.msra.mxu3 %v689_v27  ;;  %988 = vmatpush.msra.mxu1 %v596_v29  ;;  %v2088_v47 = vld [vmem:[%s2918_s0 + $0x40] sm:$0xff]  ;;  %v626_v48 = vld [vmem:[#allocation4 + $0x348] sm:$0xff]  ;;  %v79_v52 = vadd.f32 %v2083_v46, %v2078_v45  ;;  %v94_v53 = vmul.f32 %v2078_v45, %v2078_v45  ;;  %v97_v54 = vmul.f32 %v2083_v46, %v2083_v46  ;;  %v2110_v59 = vld [vmem:[%s2918_s0 + $0x8] sm:$0xff]  ;;  %v2159_v27 = vshrl.u32 %v259_v15, 7 }
  0x1c   :  { %1019 = vmatpush.msra.mxu2 %v638_v30  ;;  %960 = vmatpush.msra.mxu0 %v545_v32  ;;  %v674_v49 = vld [vmem:[#allocation4 + $0x4c8] sm:$0xff]  ;;  %v584_v50 = vld [vmem:[#allocation4 + $0x1f8] sm:$0xff]  ;;  %v100_v57 = vmul.f32 %v2088_v47, %v2088_v47  ;;  %v533_v4 = vld [vmem:[#allocation4 + $0x60] sm:$0xff]  ;;  %v2155_v21 = vmul.f32 %v2110_v59, %v2110_v59 }
  0x1d   :  { %1048 = vmatpush.msra.mxu3 %v686_v31  ;;  %989 = vmatpush.msra.mxu1 %v593_v33  ;;  %v55_v51 = vld [vmem:[%s2918_s0 + $0x58] sm:$0x1]  ;;  %v2102_v55 = vld [vmem:[%s2918_s0] sm:$0xff]  ;;  %v80_v62 = vadd.f32 %v79_v52, %v2088_v47  ;;  %v124_v63 = vadd.f32 %v97_v54, %v94_v53  ;;  %v2126_v0 = vld [vmem:[%s2918_s0 + $0x30] sm:$0xff] }
  0x1e   :  { %1020 = vmatpush.msra.mxu2 %v635_v34  ;;  %961 = vmatpush.msra.mxu0 %v542_v38  ;;  %v81_v56 = vsel %vm60_vm0, %v55_v51, 0.0  ;;  %v103_v58 = vmul.f32 %v55_v51, %v55_v51  ;;  %v2115_v60 = vld [vmem:[%s2918_s0 + $0x18] sm:$0xff]  ;;  %v2120_v61 = vld [vmem:[%s2918_s0 + $0x20] sm:$0xff]  ;;  %v2136_v2 = vld [vmem:[%s2918_s0 + $0x48] sm:$0x1]  ;;  %v92_v10 = vmul.f32 %v2102_v55, %v2102_v55  ;;  %v98_v31 = vmul.f32 %v2126_v0, %v2126_v0 }
  0x1f   :  { %1049 = vmatpush.msra.mxu3 %v683_v35  ;;  %990 = vmatpush.msra.mxu1 %v590_v39  ;;  %v2131_v1 = vld [vmem:[%s2918_s0 + $0x38] sm:$0xff]  ;;  %v58_v3 = vadd.f32 %v2115_v60, %v2102_v55  ;;  %v581_v5 = vld [vmem:[#allocation4 + $0x1e0] sm:$0xff]  ;;  %v61_v8 = vsel %vm60_vm0, %v2136_v2, 0.0  ;;  %v69_v9 = vadd.f32 %v2120_v61, %v2110_v59  ;;  %v82_v13 = vadd.f32 %v81_v56, %v80_v62  ;;  %v620_v23 = vld [vmem:[#allocation4 + $0x318] sm:$0xff] }
  0x20   :  { %1021 = vmatpush.msra.mxu2 %v632_v36  ;;  %962 = vmatpush.msra.mxu0 %v539_v42  ;;  %v126_v6 = vsel %vm60_vm0, %v103_v58, 0.0  ;;  %v54_v7 = vld [vmem:[%s2918_s0 + $0x50] sm:$0x1]  ;;  %v623_v11 = vld [vmem:[#allocation4 + $0x330] sm:$0xff]  ;;  %v125_v14 = vadd.f32 %v124_v63, %v100_v57  ;;  %v530_v17 = vld [vmem:[#allocation4 + $0x48] sm:$0xff]  ;;  %v95_v22 = vmul.f32 %v2115_v60, %v2115_v60  ;;  %v96_v30 = vmul.f32 %v2120_v61, %v2120_v61 }
  0x21   :  { %1050 = vmatpush.msra.mxu3 %v680_v37  ;;  %991 = vmatpush.msra.mxu1 %v587_v43  ;;  %v671_v12 = vld [vmem:[#allocation4 + $0x4b0] sm:$0xff]  ;;  %v59_v16 = vadd.f32 %v58_v3, %v2126_v0  ;;  %v578_v18 = vld [vmem:[#allocation4 + $0x1c8] sm:$0xff]  ;;  %v70_v19 = vadd.f32 %v69_v9, %v2131_v1  ;;  %v71_v20 = vsel %vm60_vm0, %v54_v7, 0.0  ;;  %v668_v24 = vld [vmem:[#allocation4 + $0x498] sm:$0xff]  ;;  %v83_v25 = vrot.slane %v82_v13, 4 }
  0x22   :  { %1022 = vmatpush.msra.mxu2 %v629_v40  ;;  %963 = vmatpush.msra.mxu0 %v536_v44  ;;  %v127_v26 = vadd.f32 %v126_v6, %v125_v14  ;;  %v617_v32 = vld [vmem:[#allocation4 + $0x300] sm:$0xff]  ;;  %v267_v35 = vand.u32 65535, %v2159_v27  ;;  %v99_v38 = vmul.f32 %v2131_v1, %v2131_v1  ;;  %v101_v39 = vmul.f32 %v2136_v2, %v2136_v2 }
  0x23   :  { %1051 = vmatpush.msra.mxu3 %v677_v41  ;;  %992 = vmatpush.msra.mxu1 %v584_v50  ;;  %v62_v28 = vadd.f32 %v61_v8, %v59_v16  ;;  %v72_v29 = vadd.f32 %v71_v20, %v70_v19  ;;  %v84_v33 = vadd.f32 %v83_v25, %v82_v13  ;;  %v268_v43 = vshrl.u32 %v2159_v27, 16 }
  0x24   :  { %1023 = vmatpush.msra.mxu2 %v626_v48  ;;  %964 = vmatpush.msra.mxu0 %v533_v4  ;;  %v128_v34 = vrot.slane %v127_v26, 4  ;;  %v104_v40 = vadd.f32 %v95_v22, %v92_v10  ;;  %v271_v44 = vmul.u32 52428, %v267_v35  ;;  %v106_v51 = vsel %vm60_vm0, %v101_v39, 0.0 }
  0x25   :  { %1052 = vmatpush.msra.mxu3 %v674_v49  ;;  %993 = vmatpush.msra.mxu1 %v581_v5  ;;  %v63_v36 = vrot.slane %v62_v28, 4  ;;  %v73_v37 = vrot.slane %v72_v29, 4  ;;  %v85_v41 = vrot.slane %v84_v33, 2  ;;  %v270_v54 = vmul.u32 52429, %v267_v35 }
  0x26   :  { %1024 = vmatpush.msra.mxu2 %v623_v11  ;;  %965 = vmatpush.msra.mxu0 %v530_v17  ;;  %v129_v42 = vadd.f32 %v128_v34, %v127_v26  ;;  %v105_v50 = vadd.f32 %v104_v40, %v98_v31  ;;  %v272_v56 = vmul.u32 52429, %v268_v43  ;;  %v274_v57 = vshll.u32 %v271_v44, 16 }
  0x27   :  { %1053 = vmatpush.msra.mxu3 %v671_v12  ;;  %994 = vmatpush.msra.mxu1 %v578_v18  ;;  %v64_v48 = vadd.f32 %v63_v36, %v62_v28  ;;  %v74_v49 = vadd.f32 %v73_v37, %v72_v29  ;;  %v86_v52 = vadd.f32 %v85_v41, %v84_v33  ;;  %v273_v5 = vmul.u32 52428, %v268_v43 }
  0x28   :  { %1025 = vmatpush.msra.mxu2 %v620_v23  ;;  %v130_v53 = vrot.slane %v129_v42, 2  ;;  %v102_v62 = vmul.f32 %v54_v7, %v54_v7  ;;  %v107_v63 = vadd.f32 %v106_v51, %v105_v50  ;;  %v276_v6 = vshll.u32 %v272_v56, 16 }
  0x29   :  { %1054 = vmatpush.msra.mxu3 %v668_v24  ;;  %v65_v58 = vrot.slane %v64_v48, 2  ;;  %v87_v3 = vrot.slane %v86_v52, 1  ;;  %vm278_vm1 = vc.u32 %v270_v54, %v274_v57  ;;  %v280_v8 = vadd.s32 %v274_v57, %v270_v54 }
  0x2a   :  { %1026 = vmatpush.msra.mxu2 %v617_v32  ;;  %v131_v4 = vadd.f32 %v130_v53, %v129_v42  ;;  %v2047_v12 = vmov 0   ;;  %v75_v14 = vrot.slane %v74_v49, 2  ;;  %v108_v17 = vrot.slane %v107_v63, 4 }
  0x2b   :  { %v66_v9 = vadd.f32 %v65_v58, %v64_v48  ;;  %v88_v10 = vadd.f32 %v87_v3, %v86_v52  ;;  %v279_v13 = vsel %vm278_vm1, 1, %v2047_v12  ;;  %vm282_vm2 = vc.u32 %v280_v8, %v276_v6 }
  0x2c   :  { %v132_v11 = vrot.slane %v131_v4, 1  ;;  %v281_v15 = vadd.s32 %v279_v13, %v273_v5  ;;  %v275_v19 = vshrl.u32 %v271_v44, 16  ;;  %v283_v20 = vsel %vm282_vm2, 1, %v2047_v12 }
  0x2d   :  { %v67_v16 = vrot.slane %v66_v9, 1  ;;  %v2173_v18 = vmul.f32 0.04, %v88_v10  ;;  %v109_v24 = vadd.f32 %v108_v17, %v107_v63  ;;  %v76_v28 = vadd.f32 %v75_v14, %v74_v49  ;;  %v527_v17 = vld [vmem:[#allocation4 + $0x30] sm:$0xff] }
  0x2e   :  { %v133_v7 = vadd.f32 %v132_v11, %v131_v4  ;;  %v285_v22 = vadd.s32 %v283_v20, %v281_v15  ;;  %v114_v29 = vadd.f32 %v96_v30, %v2155_v21  ;;  %v277_v31 = vshrl.u32 %v272_v56, 16  ;;  %966 = vmatpush.msra.mxu0 %v527_v17 }
  0x2f   :  { %v68_v23 = vadd.f32 %v67_v16, %v66_v9  ;;  %v139_v26 = vmul.f32 %v2173_v18, %v2173_v18  ;;  %v110_v33 = vrot.slane %v109_v24, 2  ;;  %v116_v36 = vsel %vm60_vm0, %v102_v62, 0.0  ;;  %v665_v9 = vld [vmem:[#allocation4 + $0x480] sm:$0xff] }
  0x30   :  { %v136_v25 = vmul.f32 0.04, %v133_v7  ;;  %v286_v32 = vadd.s32 %v285_v22, %v275_v19  ;;  %v115_v35 = vadd.f32 %v114_v29, %v99_v38  ;;  %v77_v41 = vrot.slane %v76_v28, 1  ;;  %1055 = vmatpush.msra.mxu3 %v665_v9  ;;  %v575_v7 = vld [vmem:[#allocation4 + $0x1b0] sm:$0xff] }
  0x31   :  { %v2180_v37 = vmul.f32 0.04, %v68_v23  ;;  %v111_v39 = vadd.f32 %v110_v33, %v109_v24  ;;  %v2187_v58 = vadd.s32 8, %v2159_v27  ;;  %995 = vmatpush.msra.mxu1 %v575_v7  ;;  %v2199_v33 = vadd.s32 16, %v2159_v27 }
  0x32   :  { %v142_v34 = vsub.f32 %v136_v25, %v139_v26  ;;  %v117_v42 = vadd.f32 %v116_v36, %v115_v35  ;;  %v287_v43 = vadd.s32 %v286_v32, %v277_v31  ;;  %v78_v30 = vadd.f32 %v77_v41, %v76_v28 }
  0x33   :  { %v112_v44 = vrot.slane %v111_v39, 1  ;;  %v137_v21 = vmul.f32 %v2180_v37, %v2180_v37  ;;  %v296_v5 = vand.u32 65535, %v2187_v58  ;;  %v297_v13 = vshrl.u32 %v2187_v58, 16 }
  0x34   :  { %v145_v40 = vmax.f32 %v142_v34, 0.0  ;;  %v118_v50 = vrot.slane %v117_v42, 4  ;;  %v288_v38 = vshrl.u32 %v287_v43, 2  ;;  %v2184_v56 = vmul.f32 0.04, %v78_v30 }
  0x35   :  { %v113_v49 = vadd.f32 %v112_v44, %v111_v39  ;;  %v300_v14 = vmul.u32 52428, %v296_v5  ;;  %v299_v20 = vmul.u32 52429, %v296_v5  ;;  %v301_v22 = vmul.u32 52429, %v297_v13  ;;  %v57_v39 = vld [vmem:[#allocation2 + $0x8] sm:$0xf] }
  0x36   :  { %v148_v48 = vadd.f32 0.001, %v145_v40  ;;  %v119_v51 = vadd.f32 %v118_v50, %v117_v42  ;;  %v289_v62 = vmul.u32 5, %v288_v38  ;;  %v138_v11 = vmul.f32 %v2184_v56, %v2184_v56 }
  0x37   :  { %v134_v52 = vmul.f32 0.04, %v113_v49  ;;  %v303_v23 = vshll.u32 %v300_v14, 16  ;;  %v302_v26 = vmul.u32 52428, %v297_v13  ;;  %v305_v28 = vshll.u32 %v301_v22, 16 }
  0x38   :  { %1975 = vrsqrt.f32 %v148_v48  ;;  %v120_v53 = vrot.slane %v119_v51, 2  ;;  %v290_v16 = vsub.s32 %v2159_v27, %v289_v62  ;;  %vm175_vm3 = vweird.f32 %v148_v48 }
  0x39   :  { %v140_v54 = vsub.f32 %v134_v52, %v137_v21  ;;  %vm307_vm5 = vc.u32 %v299_v20, %v303_v23  ;;  %v309_v32 = vadd.s32 %v303_v23, %v299_v20  ;;  %v325_v42 = vand.u32 65535, %v2199_v33 }
  0x3a   :  { %v121_v57 = vadd.f32 %v120_v53, %v119_v51  ;;  %v308_v31 = vsel %vm307_vm5, 1, %v2047_v12  ;;  %vm380_vm7 = vcmp.ne.s32.totalorder %v290_v16, 0  ;;  %vm384_vm8 = vcmp.lt.s32.totalorder %v290_v16, 0 }
  0x3b   :  { %v143_v63 = vmax.f32 %v140_v54, 0.0  ;;  %v310_v41 = vadd.s32 %v308_v31, %v302_v26  ;;  %vm311_vm9 = vc.u32 %v309_v32, %v305_v28  ;;  %v392_v43 = vadd.s32 5, %v290_v16  ;;  %vm388_vm10 = vmand %vm384_vm8, %vm380_vm7 }
  0x3c   :  { %v122_v4 = vrot.slane %v121_v57, 1  ;;  %v304_v50 = vshrl.u32 %v300_v14, 16  ;;  %v312_v21 = vsel %vm311_vm9, 1, %v2047_v12  ;;  %v326_v30 = vshrl.u32 %v2199_v33, 16 }
  0x3d   :  { %v2190_v8 = vadd.f32 0.001, %v143_v63  ;;  %v2216_v51 = vmul.u32 52428, %v325_v42  ;;  %v306_v53 = vshrl.u32 %v301_v22, 16  ;;  %v314_v54 = vadd.s32 %v312_v21, %v310_v41 }
  0x3e   :  { %v1976_v3 = vpop.eup %1975  ;;  %v123_v10 = vadd.f32 %v122_v4, %v121_v57  ;;  %v328_v57 = vmul.u32 52429, %v325_v42  ;;  %v2220_v62 = vmul.u32 52429, %v326_v30  ;;  %v2222_v4 = vsel %vm388_vm10, %v392_v43, %v290_v16  ;;  %v851_v42 = vld [vmem:[#allocation4 + $0xa50] sm:$0xff] }
  0x3f   :  { %v170_v6 = vmul.f32 %v1976_v3, %v148_v48  ;;  %1977 = vrsqrt.f32 %v2190_v8  ;;  %vm176_vm4 = vweird.f32 %v1976_v3  ;;  %v2226_v9 = vadd.s32 24, %v2159_v27  ;;  %v899_v43 = vld [vmem:[#allocation4 + $0xbd0] sm:$0xff] }
  0x40   :  { %v135_v19 = vmul.f32 0.04, %v123_v10  ;;  %vm2201_vm6 = vmor %vm175_vm3, %vm176_vm4  ;;  %v331_v13 = vmul.u32 52428, %v326_v30  ;;  %vm400_vm12 = vcmp.ne.s32.totalorder %v2222_v4, 0  ;;  %vm155_vm13 = vweird.f32 %v2190_v8 }
  0x41   :  { %v171_v15 = vmul.f32 %v1976_v3, %v170_v6  ;;  %v315_v6 = vadd.s32 %v314_v54, %v304_v50  ;;  %v354_v22 = vand.u32 65535, %v2226_v9  ;;  %v333_v32 = vshrl.u32 %v2216_v51, 16 }
  0x42   :  { %v141_v25 = vsub.f32 %v135_v19, %v138_v11  ;;  %v355_v41 = vshrl.u32 %v2226_v9, 16  ;;  %vm182_vm8 = vcmask 1043456  }
  0x43   :  { %v172_v24 = vmul.f32 0.5, %v171_v15  ;;  %v316_v14 = vadd.s32 %v315_v6, %v306_v53  ;;  %v334_v15 = vshll.u32 %v2220_v62, 16  ;;  %v2252_v21 = vmul.u32 52428, %v354_v22 }
  0x44   :  { %v144_v35 = vmax.f32 %v141_v25, 0.0  ;;  %v335_v53 = vshrl.u32 %v2220_v62, 16  ;;  %v357_v54 = vmul.u32 52429, %v354_v22  ;;  %v896_v62 = vld [vmem:[#allocation4 + $0xbb8] sm:$0xff] }
  0x45   :  { %v173_v29 = vsub.f32 1.5, %v172_v24  ;;  %v2205_v36 = vpop.eup %1977  ;;  %v317_v20 = vshrl.u32 %v316_v14, 2  ;;  %v806_v14 = vld [vmem:[#allocation4 + $0x8e8] sm:$0xff] }
  0x46   :  { %v2208_v44 = vadd.f32 0.001, %v144_v35  ;;  %v150_v48 = vmul.f32 %v2205_v36, %v2190_v8  ;;  %vm156_vm14 = vweird.f32 %v2205_v36  ;;  %v902_v35 = vld [vmem:[#allocation4 + $0xbe8] sm:$0xff] }
  0x47   :  { %v174_v40 = vmul.f32 %v1976_v3, %v173_v29  ;;  %v854_v29 = vld [vmem:[#allocation4 + $0xa68] sm:$0xff]  ;;  %v318_v31 = vmul.u32 5, %v317_v20  ;;  %1156 = vmatpush.msrb.mxu3 %v902_v35  ;;  %vm2263_vm3 = vmor %vm155_vm13, %vm156_vm14 }
  0x48   :  { %v151_v52 = vmul.f32 %v2205_v36, %v150_v48  ;;  %1979 = vrsqrt.f32 %v2208_v44  ;;  %vm165_vm15 = vweird.f32 %v2208_v44  ;;  %1127 = vmatpush.msrb.mxu2 %v854_v29  ;;  %v521_v48 = vld [vmem:[#allocation4] sm:$0xff]  ;;  %v755_v29 = vld [vmem:[#allocation4 + $0x750] sm:$0xff] }
  0x49   :  { %v178_v49 = vsel %vm2201_vm6, %v1976_v3, %v174_v40  ;;  %v332_v3 = vshll.u32 %v2216_v51, 16  ;;  %v572_v40 = vld [vmem:[#allocation4 + $0x198] sm:$0xff]  ;;  %v319_v50 = vsub.s32 %v2187_v58, %v318_v31  ;;  %1157 = vmatpush.msrb.mxu3 %v899_v43  ;;  %v887_v43 = vld [vmem:[#allocation4 + $0xb70] sm:$0xff] }
  0x4a   :  { %v186_v38 = vmul.f32 %v178_v49, %v57_v39  ;;  %v152_v5 = vmul.f32 0.5, %v151_v52  ;;  %996 = vmatpush.msra.mxu1 %v572_v40  ;;  %1128 = vmatpush.msrb.mxu2 %v851_v42  ;;  %v569_v52 = vld [vmem:[#allocation4 + $0x180] sm:$0xff]  ;;  %v848_v58 = vld [vmem:[#allocation4 + $0xa38] sm:$0xff]  ;;  %v890_v40 = vld [vmem:[#allocation4 + $0xb88] sm:$0xff] }
  0x4b   :  { %vm336_vm11 = vc.u32 %v328_v57, %v332_v3  ;;  %v338_v17 = vadd.s32 %v332_v3, %v328_v57  ;;  %vm381_vm5 = vcmp.ne.s32.totalorder %v319_v50, 0  ;;  %vm385_vm6 = vcmp.lt.s32.totalorder %v319_v50, 0  ;;  %1158 = vmatpush.msrb.mxu3 %v896_v62  ;;  %v797_v42 = vld [vmem:[#allocation4 + $0x8a0] sm:$0xff] }
  0x4c   :  { %v191_v63 = vperm.slane %v186_v38, 0  ;;  %v337_v16 = vsel %vm336_vm11, 1, %v2047_v12  ;;  %v153_v27 = vsub.f32 1.5, %v152_v5  ;;  %v393_v8 = vadd.s32 5, %v319_v50  ;;  %997 = vmatpush.msra.mxu1 %v569_v52  ;;  %1129 = vmatpush.msrb.mxu2 %v848_v58  ;;  %vm2278_vm7 = vmand %vm385_vm6, %vm381_vm5  ;;  %v749_v52 = vld [vmem:[#allocation4 + $0x720] sm:$0xff] }
  0x4d   :  { %v339_v26 = vadd.s32 %v337_v16, %v331_v13  ;;  %vm340_vm1 = vc.u32 %v338_v17, %v334_v15  ;;  %v758_v15 = vld [vmem:[#allocation4 + $0x768] sm:$0xff]  ;;  %v845_v16 = vld [vmem:[#allocation4 + $0xa20] sm:$0xff]  ;;  %vm412_vm5 = vcmp.ne.s32.totalorder %v2222_v4, 4  ;;  %vm478_vm6 = vcmask 1046528  }
  0x4e   :  { %v197_v10 = vmul.f32 %v191_v63, %v2173_v18  ;;  %v2229_v11 = vperm.slane %v191_v63, 0  ;;  %v2234_v7 = vpop.eup %1979  ;;  %v2257_v51 = vmul.f32 %v2205_v36, %v153_v27  ;;  %1098 = vmatpush.msrb.mxu1 %v806_v14  ;;  %1130 = vmatpush.msrb.mxu2 %v845_v16  ;;  %v833_v14 = vld [vmem:[#allocation4 + $0x9c0] sm:$0xff] }
  0x4f   :  { %v160_v18 = vmul.f32 %v2234_v7, %v2208_v44  ;;  %vm166_vm2 = vweird.f32 %v2234_v7  ;;  %v2282_v44 = vmul.u32 52429, %v355_v41 }
  0x50   :  { %v204_v19 = vrot.slane %v197_v10, 7  ;;  %v214_v24 = vmul.f32 %v2229_v11, %v2078_v45  ;;  %v217_v25 = vmul.f32 %v2229_v11, %v2083_v46  ;;  %v341_v45 = vsel %vm340_vm1, 1, %v2047_v12  ;;  %vm2272_vm4 = vmor %vm165_vm15, %vm166_vm2 }
  0x51   :  { %v161_v28 = vmul.f32 %v2234_v7, %v160_v18  ;;  %v343_v49 = vadd.s32 %v341_v45, %v339_v26  ;;  %v361_v10 = vshll.u32 %v2252_v21, 16  ;;  %v220_v17 = vmul.f32 %v2229_v11, %v2088_v47  ;;  %v893_v47 = vld [vmem:[#allocation4 + $0xba0] sm:$0xff]  ;;  %v752_v45 = vld [vmem:[#allocation4 + $0x738] sm:$0xff] }
  0x52   :  { %v208_v23 = vsub.f32 %v57_v39, %v204_v19  ;;  %v524_v39 = vld [vmem:[#allocation4 + $0x18] sm:$0xff]  ;;  %v2048_v18 = vmov 0.0   ;;  %v158_v22 = vsel %vm2263_vm3, %v2205_v36, %v2257_v51  ;;  %1159 = vmatpush.msrb.mxu3 %v893_v47  ;;  %v842_v36 = vld [vmem:[#allocation4 + $0xa08] sm:$0xff] }
  0x53   :  { %v162_v46 = vmul.f32 0.5, %v161_v28  ;;  %967 = vmatpush.msra.mxu0 %v524_v39  ;;  %v344_v19 = vadd.s32 %v343_v49, %v333_v32  ;;  %v2293_v20 = vsel %vm400_vm12, 1.0, %v2048_v18  ;;  %v2308_v28 = vsel %vm2278_vm7, %v393_v8, %v319_v50  ;;  %v800_v39 = vld [vmem:[#allocation4 + $0x8b8] sm:$0xff]  ;;  %1131 = vmatpush.msrb.mxu2 %v842_v36 }
  0x54   :  { %v228_v34 = vperm.slane %v208_v23, 1  ;;  %v360_v32 = vmul.u32 52428, %v355_v41  ;;  %vm365_vm9 = vc.u32 %v357_v54, %v361_v10  ;;  %1160 = vmatpush.msrb.mxu3 %v890_v40  ;;  %v367_v41 = vadd.s32 %v361_v10, %v357_v54  ;;  %v836_v54 = vld [vmem:[#allocation4 + $0x9d8] sm:$0xff]  ;;  %v794_v10 = vld [vmem:[#allocation4 + $0x888] sm:$0xff] }
  0x55   :  { %v163_v57 = vsub.f32 1.5, %v162_v46  ;;  %968 = vmatpush.msra.mxu0 %v521_v48  ;;  %v345_v31 = vadd.s32 %v344_v19, %v335_v53  ;;  %v839_v46 = vld [vmem:[#allocation4 + $0x9f0] sm:$0xff]  ;;  %v366_v58 = vsel %vm365_vm9, 1, %v2047_v12  ;;  %vm401_vm10 = vcmp.ne.s32.totalorder %v2308_v28, 0  ;;  %v884_v8 = vld [vmem:[#allocation4 + $0xb58] sm:$0xff] }
  0x56   :  { %v2254_v30 = vperm.slane %v228_v34, 1  ;;  %1132 = vmatpush.msrb.mxu2 %v839_v46  ;;  %1161 = vmatpush.msrb.mxu3 %v887_v43  ;;  %v368_v62 = vadd.s32 %v366_v58, %v360_v32  ;;  %v364_v36 = vshrl.u32 %v2282_v44, 16  ;;  %v788_v32 = vld [vmem:[#allocation4 + $0x858] sm:$0xff]  ;;  %v737_v43 = vld [vmem:[#allocation4 + $0x6c0] sm:$0xff]  ;;  %v782_v58 = vld [vmem:[#allocation4 + $0x828] sm:$0xff]  ;;  %vm413_vm7 = vcmp.ne.s32.totalorder %v2308_v28, 4 }
  0x57   :  { %v164_v13 = vmul.f32 %v2234_v7, %v163_v57  ;;  %1069 = vmatpush.msrb.mxu0 %v758_v15  ;;  %v346_v50 = vshrl.u32 %v345_v31, 2  ;;  %v654_v28 = vld [vmem:[#allocation4 + $0x428] sm:$0xff] }
  0x58   :  { %v237_v3 = vadd.f32 %v2254_v30, %v214_v24  ;;  %v240_v5 = vadd.f32 %v2254_v30, %v217_v25  ;;  %v803_v24 = vld [vmem:[#allocation4 + $0x8d0] sm:$0xff]  ;;  %v243_v48 = vadd.f32 %v2254_v30, %v220_v17  ;;  %1162 = vmatpush.msrb.mxu3 %v884_v8  ;;  %v2330_v17 = vsel %vm401_vm10, 1.0, %v2048_v18  ;;  %1133 = vmatpush.msrb.mxu2 %v836_v54  ;;  %v821_v54 = vld [vmem:[#allocation4 + $0x960] sm:$0xff] }
  0x59   :  { %v2301_v25 = vld [vmem:[#allocation2] sm:$0xff]  ;;  %v168_v26 = vsel %vm2272_vm4, %v2234_v7, %v164_v13  ;;  %1099 = vmatpush.msrb.mxu1 %v803_v24  ;;  %1070 = vmatpush.msrb.mxu0 %v755_v29  ;;  %v363_v7 = vshll.u32 %v2282_v44, 16  ;;  %v347_v63 = vmul.u32 5, %v346_v50  ;;  %v746_v13 = vld [vmem:[#allocation4 + $0x708] sm:$0xff]  ;;  %v881_v24 = vld [vmem:[#allocation4 + $0xb40] sm:$0xff] }
  0x5a   :  { %v2288_v27 = vmax.f32 %v237_v3, 0.0  ;;  %v2299_v23 = vmax.f32 %v240_v5, 0.0  ;;  %v181_v35 = vrot.slane %v168_v26, 4  ;;  %v362_v3 = vshrl.u32 %v2252_v21, 16  ;;  %1163 = vmatpush.msrb.mxu3 %v881_v24  ;;  %v743_v26 = vld [vmem:[#allocation4 + $0x6f0] sm:$0xff]  ;;  %v830_v29 = vld [vmem:[#allocation4 + $0x9a8] sm:$0xff]  ;;  %1134 = vmatpush.msrb.mxu2 %v833_v14 }
  0x5b   :  { %1100 = vmatpush.msrb.mxu1 %v800_v39  ;;  %1071 = vmatpush.msrb.mxu0 %v752_v45  ;;  %vm369_vm11 = vc.u32 %v367_v41, %v363_v7  ;;  %v348_v15 = vsub.s32 %v2199_v33, %v347_v63  ;;  %v2335_v19 = vmax.f32 %v243_v48, 0.0  ;;  %v785_v45 = vld [vmem:[#allocation4 + $0x840] sm:$0xff]  ;;  %v824_v41 = vld [vmem:[#allocation4 + $0x978] sm:$0xff]  ;;  %v731_v14 = vld [vmem:[#allocation4 + $0x690] sm:$0xff] }
  0x5c   :  { %v435_v34 = vrot.slane %v2288_v27, 7  ;;  %v183_v51 = vsel %vm182_vm8, %v158_v22, %v181_v35  ;;  %v440_v38 = vrot.slane %v2299_v23, 7  ;;  %v370_v16 = vsel %vm369_vm11, 1, %v2047_v12  ;;  %v791_v22 = vld [vmem:[#allocation4 + $0x870] sm:$0xff]  ;;  %v740_v35 = vld [vmem:[#allocation4 + $0x6d8] sm:$0xff]  ;;  %1135 = vmatpush.msrb.mxu2 %v830_v29 }
  0x5d   :  { %v185_v57 = vmul.f32 %v183_v51, %v2301_v25  ;;  %1101 = vmatpush.msrb.mxu1 %v797_v42  ;;  %1072 = vmatpush.msrb.mxu0 %v749_v52  ;;  %v372_v47 = vadd.s32 %v370_v16, %v368_v62  ;;  %vm382_vm12 = vcmp.ne.s32.totalorder %v348_v15, 0  ;;  %vm386_vm13 = vcmp.lt.s32.totalorder %v348_v15, 0  ;;  %v875_v42 = vld [vmem:[#allocation4 + $0xb10] sm:$0xff]  ;;  %v872_v52 = vld [vmem:[#allocation4 + $0xaf8] sm:$0xff] }
  0x5e   :  { %v462_v49 = vsel %vm60_vm0, %v2288_v27, %v435_v34  ;;  %v441_v21 = vsel %vm60_vm0, %v435_v34, %v440_v38  ;;  %v394_v31 = vadd.s32 5, %v348_v15  ;;  %v878_v34 = vld [vmem:[#allocation4 + $0xb28] sm:$0xff]  ;;  %vm390_vm14 = vmand %vm386_vm13, %vm382_vm12  ;;  %v446_v46 = vrot.slane %v2335_v19, 7  ;;  %v776_v24 = vld [vmem:[#allocation4 + $0x7f8] sm:$0xff] }
  0x5f   :  { %v2319_v53 = vmul.f32 %v2293_v20, %v462_v49  ;;  %v189_v5 = vperm.slane %v185_v57, 0  ;;  %v190_v6 = vperm.slane %v185_v57, 4  ;;  %1102 = vmatpush.msrb.mxu1 %v794_v10  ;;  %1073 = vmatpush.msrb.mxu0 %v746_v13  ;;  %v373_v39 = vadd.s32 %v372_v47, %v362_v3  ;;  %v734_v57 = vld [vmem:[#allocation4 + $0x6a8] sm:$0xff]  ;;  %v728_v47 = vld [vmem:[#allocation4 + $0x678] sm:$0xff] }
  0x60   :  { %1164 = vmatpush.msrb.mxu3 %v878_v34  ;;  %v2345_v44 = vsel %vm390_vm14, %v394_v31, %v348_v15  ;;  %v447_v62 = vsel %vm60_vm0, %v440_v38, %v446_v46  ;;  %v818_v15 = vld [vmem:[#allocation4 + $0x948] sm:$0xff] }
  0x61   :  { %1027 = vmatmul.f32.vlgmr.msra.gmra.mxu2 %v2319_v53  ;;  %v195_v33 = vmul.f32 %v189_v5, %v2180_v37  ;;  %v196_v12 = vmul.f32 %v190_v6, %v2184_v56  ;;  %1103 = vmatpush.msrb.mxu1 %v791_v22  ;;  %v2341_v37 = vmul.f32 %v2330_v17, %v441_v21  ;;  %v827_v56 = vld [vmem:[#allocation4 + $0x990] sm:$0xff]  ;;  %v2343_v7 = vperm.slane %v189_v5, 0 }
  0x62   :  { %1074 = vmatpush.msrb.mxu0 %v743_v26  ;;  %v2349_v50 = vperm.slane %v190_v6, 0  ;;  %vm402_vm15 = vcmp.ne.s32.totalorder %v2345_v44, 0  ;;  %1165 = vmatpush.msrb.mxu3 %v875_v42  ;;  %v374_v49 = vadd.s32 %v373_v39, %v364_v36  ;;  %v779_v5 = vld [vmem:[#allocation4 + $0x810] sm:$0xff]  ;;  %v869_v6 = vld [vmem:[#allocation4 + $0xae0] sm:$0xff]  ;;  %v812_v39 = vld [vmem:[#allocation4 + $0x918] sm:$0xff]  ;;  %vm414_vm9 = vcmp.ne.s32.totalorder %v2345_v44, 4 }
  0x63   :  { %v201_v40 = vrot.slane %v196_v12, 4  ;;  %1104 = vmatpush.msrb.mxu1 %v788_v32  ;;  %1136 = vmatpush.msrb.mxu2 %v827_v56  ;;  %v2357_v3 = vsel %vm402_vm15, 1.0, %v2048_v18  ;;  %v212_v10 = vmul.f32 %v2343_v7, %v2102_v55  ;;  %v215_v38 = vmul.f32 %v2343_v7, %v2115_v60  ;;  %v866_v55 = vld [vmem:[#allocation4 + $0xac8] sm:$0xff]  ;;  %v815_v12 = vld [vmem:[#allocation4 + $0x930] sm:$0xff] }
  0x64   :  { %1075 = vmatpush.msrb.mxu0 %v740_v35  ;;  %v375_v63 = vshrl.u32 %v374_v49, 2  ;;  %1166 = vmatpush.msrb.mxu3 %v872_v52  ;;  %v216_v22 = vmul.f32 %v2349_v50, %v2120_v61  ;;  %v773_v61 = vld [vmem:[#allocation4 + $0x7e0] sm:$0xff]  ;;  %v863_v36 = vld [vmem:[#allocation4 + $0xab0] sm:$0xff]  ;;  %v219_v56 = vmul.f32 %v2349_v50, %v2131_v1  ;;  %v770_v42 = vld [vmem:[#allocation4 + $0x7c8] sm:$0xff]  ;;  %v221_v4 = vmul.f32 %v2343_v7, %v2136_v2 }
  0x65   :  { %v202_v48 = vsel %vm182_vm8, %v195_v33, %v201_v40  ;;  %1105 = vmatpush.msrb.mxu1 %v785_v45  ;;  %1137 = vmatpush.msrb.mxu2 %v824_v41  ;;  %v725_v35 = vld [vmem:[#allocation4 + $0x660] sm:$0xff]  ;;  %v218_v40 = vmul.f32 %v2343_v7, %v2126_v0  ;;  %v722_v52 = vld [vmem:[#allocation4 + $0x648] sm:$0xff]  ;;  %v564_v7 = vld [vmem:[#allocation4 + $0x158] sm:$0xff] }
  0x66   :  { %v203_v51 = vrot.slane %v202_v48, 7  ;;  %1076 = vmatpush.msrb.mxu0 %v737_v43  ;;  %v376_v13 = vmul.u32 5, %v375_v63  ;;  %1167 = vmatpush.msrb.mxu3 %v869_v6  ;;  %v809_v0 = vld [vmem:[#allocation4 + $0x900] sm:$0xff]  ;;  %v606_v2 = vld [vmem:[#allocation4 + $0x2a8] sm:$0xff] }
  0x67   :  { %1106 = vmatpush.msrb.mxu1 %v782_v58  ;;  %1138 = vmatpush.msrb.mxu2 %v821_v54 }
  0x68   :  { %v207_v8 = vsub.f32 %v2301_v25, %v203_v51  ;;  %v213_v25 = vmul.f32 %v2349_v50, %v2110_v59  ;;  %1077 = vmatpush.msrb.mxu0 %v734_v57  ;;  %v2373_v59 = vmul.f32 %v2357_v3, %v447_v62  ;;  %v377_v33 = vsub.s32 %v2226_v9, %v376_v13  ;;  %v860_v51 = vld [vmem:[#allocation4 + $0xa98] sm:$0xff]  ;;  %v767_v57 = vld [vmem:[#allocation4 + $0x7b0] sm:$0xff]  ;;  %v857_v62 = vld [vmem:[#allocation4 + $0xa80] sm:$0xff] }
  0x69   :  { %1030 = vmatmul.f32.gmra.mxu2 %v2341_v37  ;;  %1107 = vmatpush.msrb.mxu1 %v779_v5 }
  0x6a   :  { %v226_v16 = vperm.slane %v207_v8, 1  ;;  %v227_v21 = vperm.slane %v207_v8, 5  ;;  %1078 = vmatpush.msrb.mxu0 %v731_v14  ;;  %1139 = vmatpush.msrb.mxu2 %v818_v15  ;;  %vm383_vm1 = vcmp.ne.s32.totalorder %v377_v33, 0  ;;  %vm387_vm2 = vcmp.lt.s32.totalorder %v377_v33, 0  ;;  %v719_v15 = vld [vmem:[#allocation4 + $0x630] sm:$0xff] }
  0x6b   :  { %1108 = vmatpush.msrb.mxu1 %v776_v24  ;;  %v395_v60 = vadd.s32 5, %v377_v33  ;;  %1168 = vmatpush.msrb.mxu3 %v866_v55  ;;  %vm391_vm3 = vmand %vm387_vm2, %vm383_vm1  ;;  %v716_v24 = vld [vmem:[#allocation4 + $0x618] sm:$0xff] }
  0x6c   :  { %v2376_v26 = vperm.slane %v226_v16, 1  ;;  %v2378_v29 = vperm.slane %v227_v21, 1  ;;  %1079 = vmatpush.msrb.mxu0 %v728_v47  ;;  %1140 = vmatpush.msrb.mxu2 %v815_v12  ;;  %v615_v21 = vld [vmem:[#allocation4 + $0x2f0] sm:$0xff] }
  0x6d   :  { %v2389_v45 = vsel %vm391_vm3, %v395_v60, %v377_v33  ;;  %1109 = vmatpush.msrb.mxu1 %v773_v61  ;;  %1169 = vmatpush.msrb.mxu3 %v863_v36  ;;  %v663_v12 = vld [vmem:[#allocation4 + $0x470] sm:$0xff]  ;;  %v612_v60 = vld [vmem:[#allocation4 + $0x2d8] sm:$0xff]  ;;  %v2440_v61 = vsel %vm412_vm5, 1.0, %v2048_v18  ;;  %v761_v36 = vld [vmem:[#allocation4 + $0x780] sm:$0xff] }
  0x6e   :  { %v235_v31 = vadd.f32 %v2376_v26, %v212_v10  ;;  %v236_v9 = vadd.f32 %v2378_v29, %v213_v25  ;;  %v238_v32 = vadd.f32 %v2376_v26, %v215_v38  ;;  %v239_v34 = vadd.f32 %v2378_v29, %v216_v22  ;;  %1080 = vmatpush.msrb.mxu0 %v725_v35  ;;  %v764_v38 = vld [vmem:[#allocation4 + $0x798] sm:$0xff] }
  0x6f   :  { %vm403_vm4 = vcmp.ne.s32.totalorder %v2389_v45, 0  ;;  %1141 = vmatpush.msrb.mxu2 %v812_v39  ;;  %1110 = vmatpush.msrb.mxu1 %v770_v42  ;;  %v241_v54 = vadd.f32 %v2376_v26, %v218_v40  ;;  %v242_v63 = vadd.f32 %v2378_v29, %v219_v56  ;;  %v567_v40 = vld [vmem:[#allocation4 + $0x170] sm:$0xff]  ;;  %v950_v56 = vld [vmem:[#allocation4 + $0xd68] sm:$0xff]  ;;  %vm415_vm10 = vcmp.ne.s32.totalorder %v2389_v45, 4 }
  0x70   :  { %v2391_v43 = vmax.f32 %v235_v31, 0.0  ;;  %v2393_v48 = vmax.f32 %v236_v9, 0.0  ;;  %v2395_v41 = vmax.f32 %v238_v32, 0.0  ;;  %v2397_v49 = vmax.f32 %v239_v34, 0.0  ;;  %1170 = vmatpush.msrb.mxu3 %v860_v51  ;;  %1081 = vmatpush.msrb.mxu0 %v722_v52  ;;  %v713_v31 = vld [vmem:[#allocation4 + $0x600] sm:$0xff]  ;;  %v660_v32 = vld [vmem:[#allocation4 + $0x458] sm:$0xff] }
  0x71   :  { %1033 = vmatmul.f32.gmra.mxu2 %v2373_v59  ;;  %v2406_v8 = vsel %vm403_vm4, 1.0, %v2048_v18  ;;  %1111 = vmatpush.msrb.mxu1 %v767_v57  ;;  %v2428_v22 = vmax.f32 %v241_v54, 0.0  ;;  %v609_v34 = vld [vmem:[#allocation4 + $0x2c0] sm:$0xff]  ;;  %v2532_v45 = vsel %vm415_vm10, 1.0, %v2048_v18 }
  0x72   :  { %1056 = vmatmul.f32.vlgmr.msra.gmra.mxu3 %v2391_v43  ;;  %v433_v1 = vrot.slane %v2391_v43, 7  ;;  %v434_v58 = vrot.slane %v2393_v48, 7  ;;  %v436_v10 = vrot.slane %v2395_v41, 7  ;;  %v438_v25 = vrot.slane %v2397_v49, 7  ;;  %1142 = vmatpush.msrb.mxu2 %v809_v0 }
  0x73   :  { %v2423_v16 = vmul.f32 %v2406_v8, %v446_v46  ;;  %1171 = vmatpush.msrb.mxu3 %v857_v62  ;;  %v479_v47 = vrot.slane %v2391_v43, 1  ;;  %v480_v33 = vrot.slane %v2395_v41, 1  ;;  %1082 = vmatpush.msrb.mxu0 %v719_v15  ;;  %v442_v42 = vrot.slane %v2428_v22, 7  ;;  %v600_v15 = vld [vmem:[#allocation4 + $0x278] sm:$0xff] }
  0x74   :  { %v460_v5 = vsel %vm60_vm0, %v2391_v43, %v433_v1  ;;  %v461_v6 = vsel %vm60_vm0, %v2393_v48, %v434_v58  ;;  %v437_v55 = vsel %vm60_vm0, %v433_v1, %v436_v10  ;;  %v439_v46 = vsel %vm60_vm0, %v434_v58, %v438_v25  ;;  %1243 = vmatpush.msra.mxu2 %v615_v21  ;;  %v947_v58 = vld [vmem:[#allocation4 + $0xd50] sm:$0xff] }
  0x75   :  { %v2415_v13 = vmul.f32 %v2293_v20, %v460_v5  ;;  %v2418_v14 = vmul.f32 %v2293_v20, %v461_v6  ;;  %v2430_v20 = vmax.f32 %v242_v63, 0.0  ;;  %1112 = vmatpush.msrb.mxu1 %v764_v38  ;;  %v481_v9 = vsel %vm478_vm6, %v479_v47, %v480_v33  ;;  %1083 = vmatpush.msrb.mxu0 %v716_v24  ;;  %v603_v63 = vld [vmem:[#allocation4 + $0x290] sm:$0xff]  ;;  %v561_v5 = vld [vmem:[#allocation4 + $0x140] sm:$0xff]  ;;  %v944_v6 = vld [vmem:[#allocation4 + $0xd38] sm:$0xff] }
  0x76   :  { %v2445_v35 = vmul.f32 %v2330_v17, %v437_v55  ;;  %v2448_v39 = vmul.f32 %v2330_v17, %v439_v46  ;;  %1272 = vmatpush.msra.mxu3 %v663_v12  ;;  %1244 = vmatpush.msra.mxu2 %v612_v60  ;;  %v2455_v52 = vmul.f32 %v2440_v61, %v481_v9  ;;  %v657_v17 = vld [vmem:[#allocation4 + $0x440] sm:$0xff]  ;;  %v488_v0 = vrot.slane %v2428_v22, 1  ;;  %v558_v24 = vld [vmem:[#allocation4 + $0x128] sm:$0xff]  ;;  %v648_v47 = vld [vmem:[#allocation4 + $0x3f8] sm:$0xff] }
  0x77   :  { %969 = vmatmul.f32.vlgmr.msra.gmra.mxu0 %v2415_v13  ;;  %998 = vmatmul.f32.vlgmr.msra.gmra.mxu1 %v2418_v14  ;;  %v444_v51 = vrot.slane %v2430_v20, 7  ;;  %v244_v1 = vadd.f32 %v2376_v26, %v221_v4  ;;  %v443_v57 = vsel %vm60_vm0, %v436_v10, %v442_v42  ;;  %v2470_v62 = vsel %vm413_vm7, 1.0, %v2048_v18  ;;  %v651_v10 = vld [vmem:[#allocation4 + $0x410] sm:$0xff]  ;;  %v941_v55 = vld [vmem:[#allocation4 + $0xd20] sm:$0xff]  ;;  %v552_v4 = vld [vmem:[#allocation4 + $0xf8] sm:$0xff] }
  0x78   :  { %1113 = vmatpush.msrb.mxu1 %v761_v36  ;;  %1084 = vmatpush.msrb.mxu0 %v713_v31  ;;  %v489_v26 = vsel %vm478_vm6, %v480_v33, %v488_v0  ;;  %v555_v12 = vld [vmem:[#allocation4 + $0x110] sm:$0xff]  ;;  %v482_v60 = vrot.slane %v2393_v48, 1  ;;  %v483_v36 = vrot.slane %v2397_v49, 1  ;;  %v938_v31 = vld [vmem:[#allocation4 + $0xd08] sm:$0xff]  ;;  %v645_v9 = vld [vmem:[#allocation4 + $0x3e0] sm:$0xff] }
  0x79   :  { %1036 = vmatmul.f32.gmra.mxu2 %v2423_v16  ;;  %1273 = vmatpush.msra.mxu3 %v660_v32  ;;  %v445_v54 = vsel %vm60_vm0, %v438_v25, %v444_v51  ;;  %v2475_v25 = vmul.f32 %v2357_v3, %v443_v57  ;;  %v2480_v38 = vmax.f32 %v244_v1, 0.0  ;;  %v2483_v46 = vmul.f32 %v2470_v62, %v489_v26  ;;  %v594_v32 = vld [vmem:[#allocation4 + $0x248] sm:$0xff]  ;;  %v591_v1 = vld [vmem:[#allocation4 + $0x230] sm:$0xff]  ;;  %v588_v26 = vld [vmem:[#allocation4 + $0x218] sm:$0xff] }
  0x7a   :  { %1059 = vmatmul.f32.gmra.mxu3 %v2395_v41  ;;  %1245 = vmatpush.msra.mxu2 %v609_v34  ;;  %v2478_v21 = vmul.f32 %v2357_v3, %v445_v54  ;;  %v597_v3 = vld [vmem:[#allocation4 + $0x260] sm:$0xff]  ;;  %v2493_v34 = vsel %vm414_vm9, 1.0, %v2048_v18  ;;  %v932_v54 = vld [vmem:[#allocation4 + $0xcd8] sm:$0xff]  ;;  %v630_v18 = vld [vmem:[#allocation4 + $0x368] sm:$0xff] }
  0x7b   :  { %1214 = vmatpush.msra.mxu1 %v567_v40  ;;  %1185 = vmatpush.msra.mxu0 %v950_v56  ;;  %v494_v33 = vrot.slane %v2480_v38, 1  ;;  %v935_v40 = vld [vmem:[#allocation4 + $0xcf0] sm:$0xff]  ;;  %v1987_v56 = vld [vmem:[%s2918_s0 + $0x58] sm:$0x1] }
  0x7c   :  { %1274 = vmatpush.msra.mxu3 %v657_v17  ;;  %1246 = vmatpush.msra.mxu2 %v606_v2  ;;  %v223_v17 = vmul.f32 %v1987_v56, %v2229_v11  ;;  %v2504_v2 = vmul.f32 %v2406_v8, %v442_v42  ;;  %v1988_v11 = vld [vmem:[%s2918_s0 + $0x50] sm:$0x1]  ;;  %v576_v56 = vld [vmem:[#allocation4 + $0x1b8] sm:$0xff] }
  0x7d   :  { %1215 = vmatpush.msra.mxu1 %v564_v7  ;;  %1186 = vmatpush.msra.mxu0 %v947_v58  ;;  %v495_v44 = vsel %vm478_vm6, %v488_v0, %v494_v33  ;;  %v2509_v7 = vmul.f32 %v2406_v8, %v444_v51  ;;  %v642_v0 = vld [vmem:[#allocation4 + $0x3c8] sm:$0xff]  ;;  %v484_v58 = vsel %vm478_vm6, %v482_v60, %v483_v36  ;;  %v549_v42 = vld [vmem:[#allocation4 + $0xe0] sm:$0xff]  ;;  %v639_v51 = vld [vmem:[#allocation4 + $0x3b0] sm:$0xff] }
  0x7e   :  { %1275 = vmatpush.msra.mxu3 %v654_v28  ;;  %1247 = vmatpush.msra.mxu2 %v603_v63  ;;  %v222_v57 = vmul.f32 %v1988_v11, %v2349_v50  ;;  %v2517_v28 = vadd.f32 %v2254_v30, %v223_v17  ;;  %v2520_v8 = vmul.f32 %v2493_v34, %v495_v44  ;;  %v546_v50 = vld [vmem:[#allocation4 + $0xc8] sm:$0xff]  ;;  %v490_v30 = vrot.slane %v2430_v20, 1  ;;  %v923_v60 = vld [vmem:[#allocation4 + $0xc90] sm:$0xff] }
  0x7f   :  { %972 = vmatmul.f32.gmra.mxu0 %v2445_v35  ;;  %1001 = vmatmul.f32.gmra.mxu1 %v2448_v39  ;;  %v2523_v63 = vmul.f32 %v2440_v61, %v484_v58  ;;  %v582_v33 = vld [vmem:[#allocation4 + $0x1e8] sm:$0xff]  ;;  %v573_v58 = vld [vmem:[#allocation4 + $0x1a0] sm:$0xff] }
  0x80   :  { %1216 = vmatpush.msra.mxu1 %v561_v5  ;;  %1187 = vmatpush.msra.mxu0 %v944_v6  ;;  %v245_v5 = vadd.f32 %v2378_v29, %v222_v57  ;;  %v929_v6 = vld [vmem:[#allocation4 + $0xcc0] sm:$0xff]  ;;  %v491_v29 = vsel %vm478_vm6, %v483_v36, %v490_v30  ;;  %v579_v36 = vld [vmem:[#allocation4 + $0x1d0] sm:$0xff]  ;;  %v534_v17 = vld [vmem:[#allocation4 + $0x68] sm:$0xff] }
  0x81   :  { %1143 = vmatmul.f32.vlgmr.msrb.gmra.mxu2 %v2455_v52  ;;  %1276 = vmatpush.msra.mxu3 %v651_v10  ;;  %v636_v10 = vld [vmem:[#allocation4 + $0x398] sm:$0xff]  ;;  %v531_v57 = vld [vmem:[#allocation4 + $0x50] sm:$0xff] }
  0x82   :  { %1062 = vmatmul.f32.gmra.mxu3 %v2428_v22  ;;  %1248 = vmatpush.msra.mxu2 %v600_v15  ;;  %v585_v15 = vld [vmem:[#allocation4 + $0x200] sm:$0xff] }
  0x83   :  { %1217 = vmatpush.msra.mxu1 %v558_v24  ;;  %1188 = vmatpush.msra.mxu0 %v941_v55  ;;  %v543_v24 = vld [vmem:[#allocation4 + $0xb0] sm:$0xff]  ;;  %v926_v55 = vld [vmem:[#allocation4 + $0xca8] sm:$0xff] }
  0x84   :  { %1277 = vmatpush.msra.mxu3 %v648_v47  ;;  %1249 = vmatpush.msra.mxu2 %v597_v3  ;;  %v633_v47 = vld [vmem:[#allocation4 + $0x380] sm:$0xff]  ;;  %v2536_v3 = vmax.f32 %v245_v5, 0.0  ;;  %v618_v5 = vld [vmem:[#allocation4 + $0x308] sm:$0xff] }
  0x85   :  { %1218 = vmatpush.msra.mxu1 %v555_v12  ;;  %1189 = vmatpush.msra.mxu0 %v938_v31  ;;  %v540_v12 = vld [vmem:[#allocation4 + $0x98] sm:$0xff]  ;;  %v2540_v31 = vmul.f32 %v2532_v45, %v2480_v38 }
  0x86   :  { %1278 = vmatpush.msra.mxu3 %v645_v9  ;;  %1250 = vmatpush.msra.mxu2 %v594_v32  ;;  %v2543_v9 = vmul.f32 %v2470_v62, %v491_v29  ;;  %v537_v32 = vld [vmem:[#allocation4 + $0x80] sm:$0xff]  ;;  %v496_v44 = vrot.slane %v2536_v3, 1 }
  0x87   :  { %975 = vmatmul.f32.gmra.mxu0 %v2475_v25  ;;  %1004 = vmatmul.f32.gmra.mxu1 %v2478_v21  ;;  %v905_v29 = vld [vmem:[#allocation4 + $0xc00] sm:$0xff] }
  0x88   :  { %1219 = vmatpush.msra.mxu1 %v552_v4  ;;  %1190 = vmatpush.msra.mxu0 %v935_v40  ;;  %v920_v4 = vld [vmem:[#allocation4 + $0xc78] sm:$0xff]  ;;  %v627_v40 = vld [vmem:[#allocation4 + $0x350] sm:$0xff]  ;;  %v497_v11 = vsel %vm478_vm6, %v490_v30, %v496_v44 }
  0x89   :  { %1146 = vmatmul.f32.gmra.mxu2 %v2483_v46  ;;  %1279 = vmatpush.msra.mxu3 %v642_v0  ;;  %v917_v0 = vld [vmem:[#allocation4 + $0xc60] sm:$0xff]  ;;  %v911_v30 = vld [vmem:[#allocation4 + $0xc30] sm:$0xff]  ;;  %v756_v44 = vld [vmem:[#allocation4 + $0x758] sm:$0xff] }
  0x8a   :  { %1065 = vmatmul.f32.gmra.mxu3 %v2480_v38  ;;  %1251 = vmatpush.msra.mxu2 %v591_v1  ;;  %v624_v1 = vld [vmem:[#allocation4 + $0x338] sm:$0xff] }
  0x8b   :  { %1220 = vmatpush.msra.mxu1 %v549_v42  ;;  %1191 = vmatpush.msra.mxu0 %v932_v54  ;;  %v914_v42 = vld [vmem:[#allocation4 + $0xc48] sm:$0xff]  ;;  %v621_v54 = vld [vmem:[#allocation4 + $0x320] sm:$0xff] }
  0x8c   :  { %1280 = vmatpush.msra.mxu3 %v639_v51  ;;  %1252 = vmatpush.msra.mxu2 %v588_v26  ;;  %v570_v51 = vld [vmem:[#allocation4 + $0x188] sm:$0xff]  ;;  %v2552_v26 = vmul.f32 %v2493_v34, %v497_v11  ;;  %v485_v11 = vrot.slane %v2288_v27, 1 }
  0x8d   :  { %1221 = vmatpush.msra.mxu1 %v546_v50  ;;  %1192 = vmatpush.msra.mxu0 %v929_v6  ;;  %v528_v50 = vld [vmem:[#allocation4 + $0x38] sm:$0xff]  ;;  %v525_v6 = vld [vmem:[#allocation4 + $0x20] sm:$0xff] }
  0x8e   :  { %1281 = vmatpush.msra.mxu3 %v636_v10  ;;  %1253 = vmatpush.msra.mxu2 %v585_v15  ;;  %v807_v10 = vld [vmem:[#allocation4 + $0x8f0] sm:$0xff] }
  0x8f   :  { %978 = vmatmul.f32.gmra.mxu0 %v2504_v2  ;;  %1007 = vmatmul.f32.gmra.mxu1 %v2509_v7  ;;  %v855_v15 = vld [vmem:[#allocation4 + $0xa70] sm:$0xff] }
  0x90   :  { %1222 = vmatpush.msra.mxu1 %v543_v24  ;;  %1193 = vmatpush.msra.mxu0 %v926_v55  ;;  %v908_v24 = vld [vmem:[#allocation4 + $0xc18] sm:$0xff]  ;;  %v522_v55 = vld [vmem:[#allocation4 + $0x8] sm:$0xff] }
  0x91   :  { %1149 = vmatmul.f32.gmra.mxu2 %v2520_v8  ;;  %1282 = vmatpush.msra.mxu3 %v633_v47  ;;  %v804_v47 = vld [vmem:[#allocation4 + $0x8d8] sm:$0xff] }
  0x92   :  { %1172 = vmatmul.f32.vlgmr.msrb.gmra.mxu3 %v2523_v63  ;;  %1254 = vmatpush.msra.mxu2 %v582_v33  ;;  %v852_v33 = vld [vmem:[#allocation4 + $0xa58] sm:$0xff] }
  0x93   :  { %1223 = vmatpush.msra.mxu1 %v540_v12  ;;  %1194 = vmatpush.msra.mxu0 %v923_v60  ;;  %v759_v12 = vld [vmem:[#allocation4 + $0x770] sm:$0xff]  ;;  %v2560_v60 = vmul.f32 %v2532_v45, %v2536_v3 }
  0x94   :  { %1283 = vmatpush.msra.mxu3 %v630_v18  ;;  %1255 = vmatpush.msra.mxu2 %v579_v36  ;;  %v801_v18 = vld [vmem:[#allocation4 + $0x8c0] sm:$0xff] }
  0x95   :  { %1224 = vmatpush.msra.mxu1 %v537_v32  ;;  %1195 = vmatpush.msra.mxu0 %v920_v4  ;;  %v849_v36 = vld [vmem:[#allocation4 + $0xa40] sm:$0xff]  ;;  %v711_v32 = vld [vmem:[#allocation4 + $0x5f0] sm:$0xff]  ;;  %v798_v4 = vld [vmem:[#allocation4 + $0x8a8] sm:$0xff] }
  0x96   :  { %1284 = vmatpush.msra.mxu3 %v627_v40  ;;  %1256 = vmatpush.msra.mxu2 %v576_v56  ;;  %v846_v40 = vld [vmem:[#allocation4 + $0xa28] sm:$0xff]  ;;  %v708_v56 = vld [vmem:[#allocation4 + $0x5d8] sm:$0xff] }
  0x97   :  { %1085 = vmatmul.f32.vlgmr.msrb.gmra.mxu0 %v2393_v48  ;;  %1114 = vmatmul.f32.vlgmr.msrb.gmra.mxu1 %v2288_v27 }
  0x98   :  { %1225 = vmatpush.msra.mxu1 %v534_v17  ;;  %1196 = vmatpush.msra.mxu0 %v917_v0  ;;  %v753_v17 = vld [vmem:[#allocation4 + $0x740] sm:$0xff]  ;;  %v2566_v0 = vmax.f32 %v2517_v28, 0.0  ;;  %v840_v28 = vld [vmem:[#allocation4 + $0x9f8] sm:$0xff] }
  0x99   :  { %1152 = vmatmul.f32.gmra.mxu2 %v2540_v31  ;;  %1285 = vmatpush.msra.mxu3 %v624_v1  ;;  %v795_v1 = vld [vmem:[#allocation4 + $0x890] sm:$0xff] }
  0x9a   :  { %1175 = vmatmul.f32.gmra.mxu3 %v2543_v9  ;;  %1257 = vmatpush.msra.mxu2 %v573_v58  ;;  %v843_v58 = vld [vmem:[#allocation4 + $0xa10] sm:$0xff] }
  0x9b   :  { %1226 = vmatpush.msra.mxu1 %v531_v57  ;;  %1197 = vmatpush.msra.mxu0 %v914_v42  ;;  %v486_v57 = vrot.slane %v2299_v23, 1  ;;  %v705_v42 = vld [vmem:[#allocation4 + $0x5c0] sm:$0xff] }
  0x9c   :  { %1286 = vmatpush.msra.mxu3 %v621_v54  ;;  %1258 = vmatpush.msra.mxu2 %v570_v51  ;;  %v750_v54 = vld [vmem:[#allocation4 + $0x728] sm:$0xff]  ;;  %v792_v51 = vld [vmem:[#allocation4 + $0x878] sm:$0xff] }
  0x9d   :  { %1227 = vmatpush.msra.mxu1 %v528_v50  ;;  %1198 = vmatpush.msra.mxu0 %v911_v30  ;;  %v702_v50 = vld [vmem:[#allocation4 + $0x5a8] sm:$0xff]  ;;  %v487_v30 = vsel %vm478_vm6, %v485_v11, %v486_v57 }
  0x9e   :  { %1287 = vmatpush.msra.mxu3 %v618_v5  ;;  %1359 = vmatpush.msrb.mxu2 %v807_v10  ;;  %v747_v5 = vld [vmem:[#allocation4 + $0x710] sm:$0xff]  ;;  %v837_v10 = vld [vmem:[#allocation4 + $0x9e0] sm:$0xff] }
  0x9f   :  { %1088 = vmatmul.f32.gmra.mxu0 %v2397_v49  ;;  %1117 = vmatmul.f32.gmra.mxu1 %v2299_v23 }
  0xa0   :  { %1228 = vmatpush.msra.mxu1 %v525_v6  ;;  %1388 = vmatpush.msrb.mxu3 %v855_v15  ;;  %v789_v6 = vld [vmem:[#allocation4 + $0x860] sm:$0xff]  ;;  %v699_v15 = vld [vmem:[#allocation4 + $0x590] sm:$0xff] }
  0xa1   :  { %1259 = vmatmul.f32.vlgmr.msra.gmra.mxu2 %v2418_v14  ;;  %1199 = vmatpush.msra.mxu0 %v908_v24  ;;  %v744_v24 = vld [vmem:[#allocation4 + $0x6f8] sm:$0xff] }
  0xa2   :  { %1178 = vmatmul.f32.gmra.mxu3 %v2552_v26  ;;  %1229 = vmatpush.msra.mxu1 %v522_v55  ;;  %v2576_v55 = vmul.f32 %v2440_v61, %v487_v30  ;;  %v693_v61 = vld [vmem:[#allocation4 + $0x560] sm:$0xff] }
  0xa3   :  { %1360 = vmatpush.msrb.mxu2 %v804_v47  ;;  %1389 = vmatpush.msrb.mxu3 %v852_v33  ;;  %v786_v47 = vld [vmem:[#allocation4 + $0x848] sm:$0xff] }
  0xa4   :  { %1200 = vmatpush.msra.mxu0 %v905_v29  ;;  %1330 = vmatpush.msrb.mxu1 %v759_v12  ;;  %v834_v33 = vld [vmem:[#allocation4 + $0x9c8] sm:$0xff]  ;;  %v492_v29 = vrot.slane %v2335_v19, 1  ;;  %v696_v12 = vld [vmem:[#allocation4 + $0x578] sm:$0xff] }
  0xa5   :  { %1361 = vmatpush.msrb.mxu2 %v801_v18  ;;  %1390 = vmatpush.msrb.mxu3 %v849_v36  ;;  %v741_v18 = vld [vmem:[#allocation4 + $0x6e0] sm:$0xff]  ;;  %v783_v36 = vld [vmem:[#allocation4 + $0x830] sm:$0xff] }
  0xa6   :  { %1301 = vmatpush.msrb.mxu0 %v711_v32  ;;  %1331 = vmatpush.msrb.mxu1 %v756_v44  ;;  %v831_v32 = vld [vmem:[#allocation4 + $0x9b0] sm:$0xff]  ;;  %v493_v44 = vsel %vm478_vm6, %v486_v57, %v492_v29 }
  0xa7   :  { %1091 = vmatmul.f32.gmra.mxu0 %v2430_v20  ;;  %1120 = vmatmul.f32.gmra.mxu1 %v2335_v19  ;;  %v2585_v11 = vmul.f32 %v2470_v62, %v493_v44  ;;  %v687_v57 = vld [vmem:[#allocation4 + $0x530] sm:$0xff]  ;;  %v684_v62 = vld [vmem:[#allocation4 + $0x518] sm:$0xff]  ;;  %v762_v44 = vld [vmem:[#allocation4 + $0x788] sm:$0xff] }
  0xa8   :  { %1362 = vmatpush.msrb.mxu2 %v798_v4  ;;  %1391 = vmatpush.msrb.mxu3 %v846_v40  ;;  %v738_v4 = vld [vmem:[#allocation4 + $0x6c8] sm:$0xff]  ;;  %v780_v40 = vld [vmem:[#allocation4 + $0x818] sm:$0xff] }
  0xa9   :  { %1262 = vmatmul.f32.gmra.mxu2 %v2448_v39  ;;  %1302 = vmatpush.msrb.mxu0 %v708_v56  ;;  %v828_v56 = vld [vmem:[#allocation4 + $0x998] sm:$0xff] }
  0xaa   :  { %1181 = vmatmul.f32.gmra.mxu3 %v2560_v60  ;;  %1332 = vmatpush.msrb.mxu1 %v753_v17  ;;  %v690_v17 = vld [vmem:[#allocation4 + $0x548] sm:$0xff] }
  0xab   :  { %1363 = vmatpush.msrb.mxu2 %v795_v1  ;;  %1392 = vmatpush.msrb.mxu3 %v843_v58  ;;  %v735_v1 = vld [vmem:[#allocation4 + $0x6b0] sm:$0xff]  ;;  %v777_v58 = vld [vmem:[#allocation4 + $0x800] sm:$0xff] }
  0xac   :  { %1303 = vmatpush.msrb.mxu0 %v705_v42  ;;  %1333 = vmatpush.msrb.mxu1 %v750_v54  ;;  %v825_v42 = vld [vmem:[#allocation4 + $0x980] sm:$0xff]  ;;  %v498_v54 = vrot.slane %v2566_v0, 1 }
  0xad   :  { %1364 = vmatpush.msrb.mxu2 %v792_v51  ;;  %1393 = vmatpush.msrb.mxu3 %v840_v28  ;;  %v732_v51 = vld [vmem:[#allocation4 + $0x698] sm:$0xff]  ;;  %v774_v28 = vld [vmem:[#allocation4 + $0x7e8] sm:$0xff] }
  0xae   :  { %1304 = vmatpush.msrb.mxu0 %v702_v50  ;;  %1334 = vmatpush.msrb.mxu1 %v747_v5  ;;  %v822_v50 = vld [vmem:[#allocation4 + $0x968] sm:$0xff]  ;;  %v499_v30 = vsel %vm478_vm6, %v492_v29, %v498_v54  ;;  %v729_v5 = vld [vmem:[#allocation4 + $0x680] sm:$0xff]  ;;  %v816_v29 = vld [vmem:[#allocation4 + $0x938] sm:$0xff] }
  0xaf   :  { %1094 = vmatmul.f32.gmra.mxu0 %v2536_v3  ;;  %1123 = vmatmul.f32.gmra.mxu1 %v2566_v0  ;;  %v565_v54 = vld [vmem:[#allocation4 + $0x160] sm:$0xff] }
  0xb0   :  { %1365 = vmatpush.msrb.mxu2 %v789_v6  ;;  %1394 = vmatpush.msrb.mxu3 %v837_v10  ;;  %v771_v6 = vld [vmem:[#allocation4 + $0x7d0] sm:$0xff] }
  0xb1   :  { %1305 = vmatpush.msrb.mxu0 %v699_v15  ;;  %1265 = vmatmul.f32.gmra.mxu2 %v2478_v21  ;;  %v819_v10 = vld [vmem:[#allocation4 + $0x950] sm:$0xff]  ;;  %v681_v15 = vld [vmem:[#allocation4 + $0x500] sm:$0xff] }
  0xb2   :  { %1288 = vmatmul.f32.vlgmr.msra.gmra.mxu3 %v2319_v53  ;;  %1335 = vmatpush.msrb.mxu1 %v744_v24  ;;  %v726_v24 = vld [vmem:[#allocation4 + $0x668] sm:$0xff] }
  0xb3   :  { %1366 = vmatpush.msrb.mxu2 %v786_v47  ;;  %1395 = vmatpush.msrb.mxu3 %v834_v33  ;;  %v768_v47 = vld [vmem:[#allocation4 + $0x7b8] sm:$0xff]  ;;  %v2594_v33 = vmul.f32 %v2493_v34, %v499_v30  ;;  %v903_v30 = vld [vmem:[#allocation4 + $0xbf0] sm:$0xff] }
  0xb4   :  { %1306 = vmatpush.msrb.mxu0 %v696_v12  ;;  %1336 = vmatpush.msrb.mxu1 %v741_v18  ;;  %v678_v12 = vld [vmem:[#allocation4 + $0x4e8] sm:$0xff]  ;;  %v723_v18 = vld [vmem:[#allocation4 + $0x650] sm:$0xff]  ;;  %v720_v34 = vld [vmem:[#allocation4 + $0x638] sm:$0xff] }
  0xb5   :  { %1367 = vmatpush.msrb.mxu2 %v783_v36  ;;  %1396 = vmatpush.msrb.mxu3 %v831_v32  ;;  %v765_v36 = vld [vmem:[#allocation4 + $0x7a0] sm:$0xff] }
  0xb6   :  { %1307 = vmatpush.msrb.mxu0 %v693_v61  ;;  %1337 = vmatpush.msrb.mxu1 %v738_v4  ;;  %v813_v32 = vld [vmem:[#allocation4 + $0x920] sm:$0xff]  ;;  %v675_v61 = vld [vmem:[#allocation4 + $0x4d0] sm:$0xff]  ;;  %v810_v4 = vld [vmem:[#allocation4 + $0x908] sm:$0xff] }
  0xb7   :  { %1201 = vmatmul.f32.vlgmr.msra.gmra.mxu0 %v2576_v55  ;;  %1230 = vmatmul.f32.vlgmr.msra.gmra.mxu1 %v2415_v13 }
  0xb8   :  { %1368 = vmatpush.msrb.mxu2 %v780_v40  ;;  %1397 = vmatpush.msrb.mxu3 %v828_v56  ;;  %v672_v40 = vld [vmem:[#allocation4 + $0x4b8] sm:$0xff]  ;;  %v717_v56 = vld [vmem:[#allocation4 + $0x620] sm:$0xff] }
  0xb9   :  { %1308 = vmatpush.msrb.mxu0 %v690_v17  ;;  %1338 = vmatpush.msrb.mxu1 %v735_v1  ;;  %v616_v17 = vld [vmem:[#allocation4 + $0x2f8] sm:$0xff]  ;;  %v2601_v1 = vmul.f32 %v2532_v45, %v2566_v0  ;;  %v951_v45 = vld [vmem:[#allocation4 + $0xd70] sm:$0xff] }
  0xba   :  { %1291 = vmatmul.f32.gmra.mxu3 %v2341_v37  ;;  %1369 = vmatpush.msrb.mxu2 %v777_v58  ;;  %v568_v58 = vld [vmem:[#allocation4 + $0x178] sm:$0xff] }
  0xbb   :  { %1398 = vmatpush.msrb.mxu3 %v825_v42  ;;  %1309 = vmatpush.msrb.mxu0 %v687_v57  ;;  %v669_v42 = vld [vmem:[#allocation4 + $0x4a0] sm:$0xff]  ;;  %v714_v57 = vld [vmem:[#allocation4 + $0x608] sm:$0xff] }
  0xbc   :  { %1268 = vmatmul.f32.gmra.mxu2 %v2509_v7  ;;  %1339 = vmatpush.msrb.mxu1 %v732_v51  ;;  %v613_v51 = vld [vmem:[#allocation4 + $0x2e0] sm:$0xff] }
  0xbd   :  { %1370 = vmatpush.msrb.mxu2 %v774_v28  ;;  %1399 = vmatpush.msrb.mxu3 %v822_v50  ;;  %v666_v28 = vld [vmem:[#allocation4 + $0x488] sm:$0xff] }
  0xbe   :  { %1310 = vmatpush.msrb.mxu0 %v684_v62  ;;  %1340 = vmatpush.msrb.mxu1 %v729_v5  ;;  %v562_v50 = vld [vmem:[#allocation4 + $0x148] sm:$0xff]  ;;  %v948_v5 = vld [vmem:[#allocation4 + $0xd58] sm:$0xff] }
  0xbf   :  { %1204 = vmatmul.f32.gmra.mxu0 %v2585_v11  ;;  %1233 = vmatmul.f32.gmra.mxu1 %v2445_v35  ;;  %v610_v62 = vld [vmem:[#allocation4 + $0x2c8] sm:$0xff] }
  0xc0   :  { %1371 = vmatpush.msrb.mxu2 %v771_v6  ;;  %1400 = vmatpush.msrb.mxu3 %v819_v10  ;;  %v559_v6 = vld [vmem:[#allocation4 + $0x130] sm:$0xff] }
  0xc1   :  { %1311 = vmatpush.msrb.mxu0 %v681_v15  ;;  %1341 = vmatpush.msrb.mxu1 %v726_v24  ;;  %v607_v10 = vld [vmem:[#allocation4 + $0x2b0] sm:$0xff]  ;;  %v900_v15 = vld [vmem:[#allocation4 + $0xbd8] sm:$0xff]  ;;  %v945_v24 = vld [vmem:[#allocation4 + $0xd40] sm:$0xff] }
  0xc2   :  { %1294 = vmatmul.f32.gmra.mxu3 %v2373_v59  ;;  %1372 = vmatpush.msrb.mxu2 %v768_v47  ;;  %v556_v47 = vld [vmem:[#allocation4 + $0x118] sm:$0xff] }
  0xc3   :  { %1401 = vmatpush.msrb.mxu3 %v816_v29  ;;  %1312 = vmatpush.msrb.mxu0 %v678_v12  ;;  %v604_v29 = vld [vmem:[#allocation4 + $0x298] sm:$0xff]  ;;  %v897_v12 = vld [vmem:[#allocation4 + $0xbc0] sm:$0xff] }
  0xc4   :  { %1342 = vmatpush.msrb.mxu1 %v723_v18  ;;  %1373 = vmatpush.msrb.mxu2 %v765_v36  ;;  %v942_v18 = vld [vmem:[#allocation4 + $0xd28] sm:$0xff]  ;;  %v553_v36 = vld [vmem:[#allocation4 + $0x100] sm:$0xff] }
  0xc5   :  { %1402 = vmatpush.msrb.mxu3 %v813_v32  ;;  %1313 = vmatpush.msrb.mxu0 %v675_v61  ;;  %v601_v32 = vld [vmem:[#allocation4 + $0x280] sm:$0xff]  ;;  %v894_v61 = vld [vmem:[#allocation4 + $0xba8] sm:$0xff] }
  0xc6   :  { %1343 = vmatpush.msrb.mxu1 %v720_v34  ;;  %1374 = vmatpush.msrb.mxu2 %v762_v44  ;;  %v939_v34 = vld [vmem:[#allocation4 + $0xd10] sm:$0xff]  ;;  %v550_v44 = vld [vmem:[#allocation4 + $0xe8] sm:$0xff] }
  0xc7   :  { %1207 = vmatmul.f32.gmra.mxu0 %v2594_v33  ;;  %1236 = vmatmul.f32.gmra.mxu1 %v2475_v25 }
  0xc8   :  { %1403 = vmatpush.msrb.mxu3 %v810_v4  ;;  %1314 = vmatpush.msrb.mxu0 %v672_v40  ;;  %v598_v4 = vld [vmem:[#allocation4 + $0x268] sm:$0xff]  ;;  %v891_v40 = vld [vmem:[#allocation4 + $0xb90] sm:$0xff] }
  0xc9   :  { %1344 = vmatpush.msrb.mxu1 %v717_v56  ;;  %1375 = vmatmul.f32.vlgmr.msrb.gmra.mxu2 %v2288_v27  ;;  %v936_v56 = vld [vmem:[#allocation4 + $0xcf8] sm:$0xff] }
  0xca   :  { %1297 = vmatmul.f32.gmra.mxu3 %v2423_v16  ;;  %1475 = vmatpush.msra.mxu2 %v568_v58  ;;  %v595_v58 = vld [vmem:[#allocation4 + $0x250] sm:$0xff] }
  0xcb   :  { %1504 = vmatpush.msra.mxu3 %v616_v17  ;;  %1315 = vmatpush.msrb.mxu0 %v669_v42  ;;  %v547_v17 = vld [vmem:[#allocation4 + $0xd0] sm:$0xff]  ;;  %v888_v42 = vld [vmem:[#allocation4 + $0xb78] sm:$0xff] }
  0xcc   :  { %1345 = vmatpush.msrb.mxu1 %v714_v57  ;;  %1476 = vmatpush.msra.mxu2 %v565_v54  ;;  %v933_v57 = vld [vmem:[#allocation4 + $0xce0] sm:$0xff]  ;;  %v544_v54 = vld [vmem:[#allocation4 + $0xb8] sm:$0xff] }
  0xcd   :  { %1505 = vmatpush.msra.mxu3 %v613_v51  ;;  %1316 = vmatpush.msrb.mxu0 %v666_v28  ;;  %v592_v51 = vld [vmem:[#allocation4 + $0x238] sm:$0xff]  ;;  %v885_v28 = vld [vmem:[#allocation4 + $0xb60] sm:$0xff] }
  0xce   :  { %1446 = vmatpush.msra.mxu1 %v951_v45  ;;  %1477 = vmatpush.msra.mxu2 %v562_v50  ;;  %v930_v45 = vld [vmem:[#allocation4 + $0xcc8] sm:$0xff]  ;;  %v541_v50 = vld [vmem:[#allocation4 + $0xa0] sm:$0xff] }
  0xcf   :  { %1210 = vmatmul.f32.gmra.mxu0 %v2601_v1  ;;  %1239 = vmatmul.f32.gmra.mxu1 %v2504_v2 }
  0xd0   :  { %1506 = vmatpush.msra.mxu3 %v610_v62  ;;  %1417 = vmatpush.msra.mxu0 %v903_v30  ;;  %v589_v62 = vld [vmem:[#allocation4 + $0x220] sm:$0xff] }
  0xd1   :  { %1447 = vmatpush.msra.mxu1 %v948_v5  ;;  %1478 = vmatpush.msra.mxu2 %v559_v6  ;;  %v882_v5 = vld [vmem:[#allocation4 + $0xb48] sm:$0xff]  ;;  %v927_v6 = vld [vmem:[#allocation4 + $0xcb0] sm:$0xff] }
  0xd2   :  { %1404 = vmatmul.f32.vlgmr.msrb.gmra.mxu3 %v2455_v52  ;;  %1418 = vmatpush.msra.mxu0 %v900_v15  ;;  %v586_v15 = vld [vmem:[#allocation4 + $0x208] sm:$0xff] }
  0xd3   :  { %1507 = vmatpush.msra.mxu3 %v607_v10  ;;  %1378 = vmatmul.f32.gmra.mxu2 %v2299_v23  ;;  %v538_v10 = vld [vmem:[#allocation4 + $0x88] sm:$0xff] }
  0xd4   :  { %1448 = vmatpush.msra.mxu1 %v945_v24  ;;  %1479 = vmatpush.msra.mxu2 %v556_v47  ;;  %v879_v24 = vld [vmem:[#allocation4 + $0xb30] sm:$0xff]  ;;  %v924_v47 = vld [vmem:[#allocation4 + $0xc98] sm:$0xff] }
  0xd5   :  { %1508 = vmatpush.msra.mxu3 %v604_v29  ;;  %1419 = vmatpush.msra.mxu0 %v897_v12  ;;  %v535_v29 = vld [vmem:[#allocation4 + $0x70] sm:$0xff] }
  0xd6   :  { %1449 = vmatpush.msra.mxu1 %v942_v18  ;;  %1480 = vmatpush.msra.mxu2 %v553_v36  ;;  %v583_v12 = vld [vmem:[#allocation4 + $0x1f0] sm:$0xff]  ;;  %v876_v18 = vld [vmem:[#allocation4 + $0xb18] sm:$0xff]  ;;  %v921_v36 = vld [vmem:[#allocation4 + $0xc80] sm:$0xff] }
  0xd7   :  { %1317 = vmatmul.f32.vlgmr.msrb.gmra.mxu0 %v2391_v43  ;;  %1346 = vmatmul.f32.vlgmr.msrb.gmra.mxu1 %v2393_v48 }
  0xd8   :  { %1509 = vmatpush.msra.mxu3 %v601_v32  ;;  %1420 = vmatpush.msra.mxu0 %v894_v61  ;;  %v532_v32 = vld [vmem:[#allocation4 + $0x58] sm:$0xff] }
  0xd9   :  { %1450 = vmatpush.msra.mxu1 %v939_v34  ;;  %1481 = vmatpush.msra.mxu2 %v550_v44  ;;  %v580_v61 = vld [vmem:[#allocation4 + $0x1d8] sm:$0xff]  ;;  %v873_v44 = vld [vmem:[#allocation4 + $0xb00] sm:$0xff] }
  0xda   :  { %1407 = vmatmul.f32.gmra.mxu3 %v2483_v46  ;;  %1421 = vmatpush.msra.mxu0 %v891_v40  ;;  %v529_v40 = vld [vmem:[#allocation4 + $0x40] sm:$0xff] }
  0xdb   :  { %1510 = vmatpush.msra.mxu3 %v598_v4  ;;  %1451 = vmatpush.msra.mxu1 %v936_v56  ;;  %v918_v4 = vld [vmem:[#allocation4 + $0xc68] sm:$0xff]  ;;  %v577_v56 = vld [vmem:[#allocation4 + $0x1c0] sm:$0xff] }
  0xdc   :  { %1482 = vmatpush.msra.mxu2 %v547_v17  ;;  %1422 = vmatpush.msra.mxu0 %v888_v42  ;;  %v870_v17 = vld [vmem:[#allocation4 + $0xae8] sm:$0xff] }
  0xdd   :  { %1511 = vmatpush.msra.mxu3 %v595_v58  ;;  %1381 = vmatmul.f32.gmra.mxu2 %v2335_v19  ;;  %v915_v58 = vld [vmem:[#allocation4 + $0xc50] sm:$0xff]  ;;  %v526_v42 = vld [vmem:[#allocation4 + $0x28] sm:$0xff] }
  0xde   :  { %1452 = vmatpush.msra.mxu1 %v933_v57  ;;  %1483 = vmatpush.msra.mxu2 %v544_v54  ;;  %v574_v57 = vld [vmem:[#allocation4 + $0x1a8] sm:$0xff]  ;;  %v867_v54 = vld [vmem:[#allocation4 + $0xad0] sm:$0xff] }
  0xdf   :  { %1320 = vmatmul.f32.gmra.mxu0 %v2395_v41  ;;  %1349 = vmatmul.f32.gmra.mxu1 %v2397_v49 }
  0xe0   :  { %1512 = vmatpush.msra.mxu3 %v592_v51  ;;  %1423 = vmatpush.msra.mxu0 %v885_v28  ;;  %v912_v51 = vld [vmem:[#allocation4 + $0xc38] sm:$0xff]  ;;  %v523_v28 = vld [vmem:[#allocation4 + $0x10] sm:$0xff] }
  0xe1   :  { %1453 = vmatpush.msra.mxu1 %v930_v45  ;;  %1484 = vmatpush.msra.mxu2 %v541_v50  ;;  %v571_v45 = vld [vmem:[#allocation4 + $0x190] sm:$0xff]  ;;  %v864_v50 = vld [vmem:[#allocation4 + $0xab8] sm:$0xff] }
  0xe2   :  { %1410 = vmatmul.f32.gmra.mxu3 %v2520_v8  ;;  %1424 = vmatpush.msra.mxu0 %v882_v5  ;;  %v909_v5 = vld [vmem:[#allocation4 + $0xc20] sm:$0xff] }
  0xe3   :  { %1513 = vmatpush.msra.mxu3 %v589_v62  ;;  %1454 = vmatpush.msra.mxu1 %v927_v6  ;;  %v760_v6 = vld [vmem:[#allocation4 + $0x778] sm:$0xff] }
  0xe4   :  { %v2615_v30 = vpop.f32.mrf.mxu2  ;;  %1485 = vmatpush.msra.mxu2 %v538_v10  ;;  %1425 = vmatpush.msra.mxu0 %v879_v24  ;;  %v808_v10 = vld [vmem:[#allocation4 + $0x8f8] sm:$0xff] }
  0xe5   :  { %1514 = vmatpush.msra.mxu3 %v586_v15  ;;  %1455 = vmatpush.msra.mxu1 %v924_v47  ;;  %v861_v47 = vld [vmem:[#allocation4 + $0xaa0] sm:$0xff] }
  0xe6   :  { %1486 = vmatpush.msra.mxu2 %v535_v29  ;;  %1426 = vmatpush.msra.mxu0 %v876_v18  ;;  %v757_v18 = vld [vmem:[#allocation4 + $0x760] sm:$0xff] }
  0xe7   :  { %1323 = vmatmul.f32.gmra.mxu0 %v2428_v22  ;;  %1352 = vmatmul.f32.gmra.mxu1 %v2430_v20 }
  0xe8   :  { %1515 = vmatpush.msra.mxu3 %v583_v12  ;;  %1384 = vmatmul.f32.gmra.mxu2 %v2566_v0  ;;  %v906_v12 = vld [vmem:[#allocation4 + $0xc08] sm:$0xff] }
  0xe9   :  { %1456 = vmatpush.msra.mxu1 %v921_v36  ;;  %1487 = vmatpush.msra.mxu2 %v532_v32  ;;  %v805_v36 = vld [vmem:[#allocation4 + $0x8e0] sm:$0xff]  ;;  %v858_v32 = vld [vmem:[#allocation4 + $0xa88] sm:$0xff] }
  0xea   :  { %1413 = vmatmul.f32.gmra.mxu3 %v2540_v31  ;;  %1427 = vmatpush.msra.mxu0 %v873_v44  ;;  %v754_v44 = vld [vmem:[#allocation4 + $0x748] sm:$0xff] }
  0xeb   :  { %1516 = vmatpush.msra.mxu3 %v580_v61  ;;  %1457 = vmatpush.msra.mxu1 %v918_v4  ;;  %v712_v61 = vld [vmem:[#allocation4 + $0x5f8] sm:$0xff]  ;;  %v802_v4 = vld [vmem:[#allocation4 + $0x8c8] sm:$0xff] }
  0xec   :  { %v2619_v34 = vpop.f32.mrf.mxu2  ;;  %1488 = vmatpush.msra.mxu2 %v529_v40  ;;  %1428 = vmatpush.msra.mxu0 %v870_v17  ;;  %v709_v40 = vld [vmem:[#allocation4 + $0x5e0] sm:$0xff] }
  0xed   :  { %1517 = vmatpush.msra.mxu3 %v577_v56  ;;  %1458 = vmatpush.msra.mxu1 %v915_v58  ;;  %v799_v56 = vld [vmem:[#allocation4 + $0x8b0] sm:$0xff]  ;;  %v661_v58 = vld [vmem:[#allocation4 + $0x460] sm:$0xff] }
  0xee   :  { %1489 = vmatpush.msra.mxu2 %v526_v42  ;;  %1429 = vmatpush.msra.mxu0 %v867_v54  ;;  %v706_v54 = vld [vmem:[#allocation4 + $0x5c8] sm:$0xff] }
  0xef   :  { %1355 = vmatmul.f32.gmra.mxu1 %v2536_v3  ;;  %1326 = vmatmul.f32.gmra.mxu0 %v2480_v38 }
  0xf0   :  { %1518 = vmatpush.msra.mxu3 %v574_v57  ;;  %1459 = vmatpush.msra.mxu1 %v912_v51 }
  0xf1   :  { %1490 = vmatpush.msra.mxu2 %v523_v28  ;;  %1430 = vmatpush.msra.mxu0 %v864_v50  ;;  %v748_v28 = vld [vmem:[#allocation4 + $0x718] sm:$0xff]  ;;  %v658_v50 = vld [vmem:[#allocation4 + $0x448] sm:$0xff] }
  0xf2   :  { %1519 = vmatpush.msra.mxu3 %v571_v45  ;;  %1460 = vmatpush.msra.mxu1 %v909_v5  ;;  %v796_v45 = vld [vmem:[#allocation4 + $0x898] sm:$0xff]  ;;  %v703_v5 = vld [vmem:[#allocation4 + $0x5b0] sm:$0xff] }
  0xf3   :  { %1520 = vmatmul.f32.vlgmr.msra.gmra.mxu3 %v2418_v14  ;;  %1491 = vmatmul.f32.vlgmr.msra.gmra.mxu2 %v2415_v13  ;;  %v664_v14 = vld [vmem:[#allocation4 + $0x478] sm:$0xff]  ;;  %v751_v13 = vld [vmem:[#allocation4 + $0x730] sm:$0xff] }
  0xf4   :  { %v2625_v62 = vpop.f32.mrf.mxu2  ;;  %v2627_v15 = vpop.f32.mrf.mxu0  ;;  %1591 = vmatpush.msrb.mxu2 %v760_v6  ;;  %1620 = vmatpush.msrb.mxu3 %v808_v10  ;;  %v745_v6 = vld [vmem:[#allocation4 + $0x700] sm:$0xff] }
  0xf5   :  { %v2629_v24 = vpop.f32.mrf.mxu1  ;;  %v2632_v29 = vpop.f32.mrf.mxu3  ;;  %1431 = vmatpush.msra.mxu0 %v861_v47  ;;  %1461 = vmatpush.msra.mxu1 %v906_v12  ;;  %v793_v10 = vld [vmem:[#allocation4 + $0x880] sm:$0xff]  ;;  %v655_v47 = vld [vmem:[#allocation4 + $0x430] sm:$0xff]  ;;  %v700_v12 = vld [vmem:[#allocation4 + $0x598] sm:$0xff] }
  0xf6   :  { %1592 = vmatpush.msrb.mxu2 %v757_v18  ;;  %1621 = vmatpush.msrb.mxu3 %v805_v36  ;;  %v742_v18 = vld [vmem:[#allocation4 + $0x6e8] sm:$0xff] }
  0xf7   :  { %1432 = vmatpush.msra.mxu0 %v858_v32  ;;  %1462 = vmatmul.f32.vlgmr.msra.gmra.mxu1 %v2576_v55  ;;  %v790_v36 = vld [vmem:[#allocation4 + $0x868] sm:$0xff] }
  0xf8   :  { %1433 = vmatmul.f32.vlgmr.msra.gmra.mxu0 %v2523_v63  ;;  %1562 = vmatpush.msrb.mxu1 %v712_v61 }
  0xf9   :  { %1593 = vmatpush.msrb.mxu2 %v754_v44  ;;  %1622 = vmatpush.msrb.mxu3 %v802_v4  ;;  %v739_v4 = vld [vmem:[#allocation4 + $0x6d0] sm:$0xff] }
  0xfa   :  { %1533 = vmatpush.msrb.mxu0 %v664_v14  ;;  %1563 = vmatpush.msrb.mxu1 %v709_v40  ;;  %v787_v14 = vld [vmem:[#allocation4 + $0x850] sm:$0xff] }
  0xfb   :  { %1594 = vmatpush.msrb.mxu2 %v751_v13  ;;  %1623 = vmatpush.msrb.mxu3 %v799_v56  ;;  %v649_v13 = vld [vmem:[#allocation4 + $0x400] sm:$0xff]  ;;  %v694_v56 = vld [vmem:[#allocation4 + $0x568] sm:$0xff] }
  0xfc   :  { %v2637_v17 = vpop.f32.mrf.mxu2  ;;  %v2639_v42 = vpop.f32.mrf.mxu0  ;;  %1523 = vmatmul.f32.gmra.mxu3 %v2448_v39  ;;  %1534 = vmatpush.msrb.mxu0 %v661_v58  ;;  %v652_v39 = vld [vmem:[#allocation4 + $0x418] sm:$0xff] }
  0xfd   :  { %v2641_v57 = vpop.f32.mrf.mxu1  ;;  %v2643_v51 = vpop.f32.mrf.mxu3  ;;  %1494 = vmatmul.f32.gmra.mxu2 %v2445_v35  ;;  %1564 = vmatpush.msrb.mxu1 %v706_v54  ;;  %v697_v35 = vld [vmem:[#allocation4 + $0x580] sm:$0xff]  ;;  %v736_v58 = vld [vmem:[#allocation4 + $0x6b8] sm:$0xff] }
  0xfe   :  { %1595 = vmatpush.msrb.mxu2 %v748_v28  ;;  %1624 = vmatpush.msrb.mxu3 %v796_v45  ;;  %v784_v54 = vld [vmem:[#allocation4 + $0x838] sm:$0xff]  ;;  %v646_v28 = vld [vmem:[#allocation4 + $0x3e8] sm:$0xff]  ;;  %v691_v45 = vld [vmem:[#allocation4 + $0x550] sm:$0xff] }
  0xff   :  { %1535 = vmatpush.msrb.mxu0 %v658_v50  ;;  %1565 = vmatpush.msrb.mxu1 %v703_v5  ;;  %v733_v50 = vld [vmem:[#allocation4 + $0x6a0] sm:$0xff] }
 0x100   :  { %1596 = vmatpush.msrb.mxu2 %v745_v6  ;;  %1625 = vmatpush.msrb.mxu3 %v793_v10  ;;  %v781_v5 = vld [vmem:[#allocation4 + $0x820] sm:$0xff]  ;;  %v1000_v6 = vadd.f32 %v2629_v24, %v2627_v15  ;;  %v643_v10 = vld [vmem:[#allocation4 + $0x3d0] sm:$0xff]  ;;  %v640_v15 = vld [vmem:[#allocation4 + $0x3b8] sm:$0xff] }
 0x101   :  { %1536 = vmatpush.msrb.mxu0 %v655_v47  ;;  %1465 = vmatmul.f32.gmra.mxu1 %v2585_v11  ;;  %v688_v47 = vld [vmem:[#allocation4 + $0x538] sm:$0xff]  ;;  %v685_v24 = vld [vmem:[#allocation4 + $0x520] sm:$0xff] }
 0x102   :  { %1436 = vmatmul.f32.gmra.mxu0 %v2543_v9  ;;  %1566 = vmatpush.msrb.mxu1 %v700_v12 }
 0x103   :  { %1597 = vmatpush.msrb.mxu2 %v742_v18  ;;  %1626 = vmatpush.msrb.mxu3 %v790_v36  ;;  %v778_v36 = vld [vmem:[#allocation4 + $0x808] sm:$0xff] }
 0x104   :  { %v2647_v32 = vpop.f32.mrf.mxu2  ;;  %v2650_v61 = vpop.f32.mrf.mxu0  ;;  %1537 = vmatpush.msrb.mxu0 %v652_v39  ;;  %1567 = vmatpush.msrb.mxu1 %v697_v35 }
 0x105   :  { %v2652_v44 = vpop.f32.mrf.mxu1  ;;  %v2655_v40 = vpop.f32.mrf.mxu3  ;;  %1598 = vmatpush.msrb.mxu2 %v739_v4  ;;  %1627 = vmatpush.msrb.mxu3 %v787_v14  ;;  %v1029_v4 = vadd.f32 %v2615_v30, %v1000_v6  ;;  %v727_v14 = vld [vmem:[#allocation4 + $0x670] sm:$0xff] }
 0x106   :  { %1526 = vmatmul.f32.gmra.mxu3 %v2478_v21  ;;  %1538 = vmatpush.msrb.mxu0 %v649_v13  ;;  %v730_v21 = vld [vmem:[#allocation4 + $0x688] sm:$0xff]  ;;  %v775_v13 = vld [vmem:[#allocation4 + $0x7f0] sm:$0xff] }
 0x107   :  { %1497 = vmatmul.f32.gmra.mxu2 %v2475_v25  ;;  %1568 = vmatpush.msrb.mxu1 %v694_v56  ;;  %v1058_v30 = vadd.f32 %v2632_v29, %v1029_v4  ;;  %v679_v6 = vld [vmem:[#allocation4 + $0x4f0] sm:$0xff] }
 0x108   :  { %1599 = vmatpush.msrb.mxu2 %v736_v58  ;;  %1628 = vmatpush.msrb.mxu3 %v784_v54  ;;  %v637_v58 = vld [vmem:[#allocation4 + $0x3a0] sm:$0xff]  ;;  %v682_v54 = vld [vmem:[#allocation4 + $0x508] sm:$0xff]  ;;  %v715_v4 = vld [vmem:[#allocation4 + $0x610] sm:$0xff] }
 0x109   :  { %1539 = vmatpush.msrb.mxu0 %v646_v28  ;;  %1569 = vmatpush.msrb.mxu1 %v691_v45  ;;  %v724_v45 = vld [vmem:[#allocation4 + $0x658] sm:$0xff] }
 0x10a   :  { %1600 = vmatpush.msrb.mxu2 %v733_v50  ;;  %1629 = vmatpush.msrb.mxu3 %v781_v5  ;;  %v772_v50 = vld [vmem:[#allocation4 + $0x7d8] sm:$0xff]  ;;  %v1003_v5 = vadd.f32 %v2641_v57, %v2639_v42  ;;  %v718_v57 = vld [vmem:[#allocation4 + $0x628] sm:$0xff] }
 0x10b   :  { %1540 = vmatpush.msrb.mxu0 %v643_v10  ;;  %1468 = vmatmul.f32.gmra.mxu1 %v2594_v33  ;;  %v721_v10 = vld [vmem:[#allocation4 + $0x640] sm:$0xff]  ;;  %v676_v42 = vld [vmem:[#allocation4 + $0x4d8] sm:$0xff] }
 0x10c   :  { %v979_v12 = vpop.f32.mrf.mxu0  ;;  %v2661_v35 = vpop.f32.mrf.mxu2  ;;  %1439 = vmatmul.f32.gmra.mxu0 %v2552_v26  ;;  %1570 = vmatpush.msrb.mxu1 %v688_v47  ;;  %v769_v47 = vld [vmem:[#allocation4 + $0x7c0] sm:$0xff] }
 0x10d   :  { %v1008_v18 = vpop.f32.mrf.mxu1  ;;  %v1066_v25 = vpop.f32.mrf.mxu3  ;;  %1601 = vmatpush.msrb.mxu2 %v730_v21  ;;  %1630 = vmatpush.msrb.mxu3 %v778_v36  ;;  %v631_v21 = vld [vmem:[#allocation4 + $0x370] sm:$0xff] }
 0x10e   :  { %v1009_v39 = vadd.f32 %v1008_v18, %v979_v12  ;;  %1541 = vmatpush.msrb.mxu0 %v640_v15  ;;  %1571 = vmatpush.msrb.mxu1 %v685_v24  ;;  %v628_v15 = vld [vmem:[#allocation4 + $0x358] sm:$0xff]  ;;  %v673_v24 = vld [vmem:[#allocation4 + $0x4c0] sm:$0xff] }
 0x10f   :  { %1602 = vmatpush.msrb.mxu2 %v727_v14  ;;  %1631 = vmatpush.msrb.mxu3 %v775_v13  ;;  %v763_v14 = vld [vmem:[#allocation4 + $0x790] sm:$0xff] }
 0x110   :  { %v1038_v56 = vadd.f32 %v2637_v17, %v1009_v39  ;;  %1529 = vmatmul.f32.gmra.mxu3 %v2509_v7  ;;  %1542 = vmatpush.msrb.mxu0 %v637_v58  ;;  %v634_v17 = vld [vmem:[#allocation4 + $0x388] sm:$0xff]  ;;  %v1032_v7 = vadd.f32 %v2619_v34, %v1003_v5  ;;  %v625_v34 = vld [vmem:[#allocation4 + $0x340] sm:$0xff]  ;;  %v1006_v58 = vadd.f32 %v2652_v44, %v2650_v61 }
 0x111   :  { %1500 = vmatmul.f32.gmra.mxu2 %v2504_v2  ;;  %1572 = vmatpush.msrb.mxu1 %v682_v54  ;;  %v766_v39 = vld [vmem:[#allocation4 + $0x7a8] sm:$0xff]  ;;  %v853_v61 = vld [vmem:[#allocation4 + $0xa60] sm:$0xff] }
 0x112   :  { %v2667_v28 = vadd.f32 %v1066_v25, %v1038_v56  ;;  %1603 = vmatpush.msrb.mxu2 %v724_v45  ;;  %1632 = vmatpush.msrb.mxu3 %v772_v50  ;;  %v1061_v56 = vadd.f32 %v2643_v51, %v1032_v7  ;;  %v670_v54 = vld [vmem:[#allocation4 + $0x4a8] sm:$0xff]  ;;  %v856_v50 = vld [vmem:[#allocation4 + $0xa78] sm:$0xff]  ;;  %v949_v44 = vld [vmem:[#allocation4 + $0xd60] sm:$0xff] }
 0x113   :  { %1543 = vmatpush.msrb.mxu0 %v634_v17  ;;  %1573 = vmatpush.msrb.mxu1 %v679_v6  ;;  %v667_v6 = vld [vmem:[#allocation4 + $0x490] sm:$0xff]  ;;  %v901_v7 = vld [vmem:[#allocation4 + $0xbe0] sm:$0xff] }
 0x114   :  { %v1086_v12 = vpop.f32.mrf.mxu0  ;;  %1604 = vmatpush.msrb.mxu2 %v721_v10  ;;  %1633 = vmatpush.msrb.mxu3 %v769_v47  ;;  %v2675_v25 = vpop.f32.mrf.mxu2  ;;  %v1035_v47 = vadd.f32 %v2625_v62, %v1006_v58  ;;  %v838_v58 = vld [vmem:[#allocation4 + $0x9e8] sm:$0xff] }
 0x115   :  { %v1115_v18 = vpop.f32.mrf.mxu1  ;;  %v1087_v36 = vadd.f32 %v1086_v12, %v1058_v30  ;;  %v1173_v29 = vpop.f32.mrf.mxu3  ;;  %1544 = vmatpush.msrb.mxu0 %v631_v21  ;;  %1471 = vmatmul.f32.gmra.mxu1 %v2601_v1  ;;  %v952_v30 = vld [vmem:[#allocation4 + $0xd78] sm:$0xff]  ;;  %v619_v12 = vld [vmem:[#allocation4 + $0x310] sm:$0xff]  ;;  %v850_v21 = vld [vmem:[#allocation4 + $0xa48] sm:$0xff] }
 0x116   :  { %1442 = vmatmul.f32.gmra.mxu0 %v2560_v60  ;;  %1574 = vmatpush.msrb.mxu1 %v676_v42  ;;  %v1064_v62 = vadd.f32 %v2655_v40, %v1035_v47  ;;  %v940_v40 = vld [vmem:[#allocation4 + $0xd18] sm:$0xff] }
 0x117   :  { %v1116_v2 = vadd.f32 %v1115_v18, %v1087_v36  ;;  %1605 = vmatpush.msrb.mxu2 %v718_v57  ;;  %1634 = vmatpush.msrb.mxu3 %v766_v39  ;;  %v946_v36 = vld [vmem:[#allocation4 + $0xd48] sm:$0xff]  ;;  %v943_v57 = vld [vmem:[#allocation4 + $0xd30] sm:$0xff] }
 0x118   :  { %1545 = vmatpush.msrb.mxu0 %v628_v15  ;;  %1575 = vmatpush.msrb.mxu1 %v673_v24 }
 0x119   :  { %v1145_v13 = vadd.f32 %v2647_v32, %v1116_v2  ;;  %1606 = vmatpush.msrb.mxu2 %v715_v4  ;;  %1635 = vmatpush.msrb.mxu3 %v763_v14  ;;  %v622_v32 = vld [vmem:[#allocation4 + $0x328] sm:$0xff] }
 0x11a   :  { %1546 = vmatpush.msrb.mxu0 %v625_v34  ;;  %1636 = vmatmul.f32.vlgmr.msrb.gmra.mxu3 %v2288_v27  ;;  %v904_v27 = vld [vmem:[#allocation4 + $0xbf8] sm:$0xff]  ;;  %v937_v34 = vld [vmem:[#allocation4 + $0xd00] sm:$0xff] }
 0x11b   :  { %v2683_v45 = vadd.f32 %v1173_v29, %v1145_v13  ;;  %1576 = vmatpush.msrb.mxu1 %v670_v54  ;;  %1607 = vmatmul.f32.vlgmr.msrb.gmra.mxu2 %v2393_v48  ;;  %v847_v48 = vld [vmem:[#allocation4 + $0xa30] sm:$0xff]  ;;  %v892_v54 = vld [vmem:[#allocation4 + $0xb98] sm:$0xff] }
 0x11c   :  { %v1089_v5 = vpop.f32.mrf.mxu0  ;;  %1953 = vmatpush.msra.mxu3 %v856_v50  ;;  %1707 = vmatpush.msra.mxu2 %v952_v30  ;;  %v2689_v42 = vpop.f32.mrf.mxu2  ;;  %v895_v13 = vld [vmem:[#allocation4 + $0xbb0] sm:$0xff] }
 0x11d   :  { %v1118_v17 = vpop.f32.mrf.mxu1  ;;  %v1090_v51 = vadd.f32 %v1089_v5, %v1061_v56  ;;  %v1176_v10 = vpop.f32.mrf.mxu3  ;;  %1547 = vmatpush.msrb.mxu0 %v622_v32  ;;  %1577 = vmatpush.msrb.mxu1 %v667_v6  ;;  %v931_v32 = vld [vmem:[#allocation4 + $0xcd0] sm:$0xff] }
 0x11e   :  { %1954 = vmatpush.msra.mxu3 %v853_v61  ;;  %1708 = vmatpush.msra.mxu2 %v949_v44  ;;  %v928_v44 = vld [vmem:[#allocation4 + $0xcb8] sm:$0xff] }
 0x11f   :  { %v1119_v18 = vadd.f32 %v1118_v17, %v1090_v51  ;;  %1548 = vmatpush.msrb.mxu0 %v619_v12  ;;  %1578 = vmatmul.f32.vlgmr.msrb.gmra.mxu1 %v2391_v43  ;;  %v898_v43 = vld [vmem:[#allocation4 + $0xbc8] sm:$0xff]  ;;  %v925_v12 = vld [vmem:[#allocation4 + $0xca0] sm:$0xff] }
 0x120   :  { %1549 = vmatmul.f32.vlgmr.msrb.gmra.mxu0 %v2319_v53  ;;  %1955 = vmatpush.msra.mxu3 %v850_v21  ;;  %v841_v53 = vld [vmem:[#allocation4 + $0xa00] sm:$0xff] }
 0x121   :  { %v1148_v29 = vadd.f32 %v2661_v35, %v1119_v18  ;;  %1678 = vmatpush.msra.mxu1 %v904_v27  ;;  %1709 = vmatpush.msra.mxu2 %v946_v36  ;;  %v844_v35 = vld [vmem:[#allocation4 + $0xa18] sm:$0xff] }
 0x122   :  { %1649 = vmatpush.msra.mxu0 %v856_v50  ;;  %1956 = vmatpush.msra.mxu3 %v847_v48  ;;  %v934_v50 = vld [vmem:[#allocation4 + $0xce8] sm:$0xff] }
 0x123   :  { %v2694_v39 = vadd.f32 %v1176_v10, %v1148_v29  ;;  %1679 = vmatpush.msra.mxu1 %v901_v7  ;;  %1710 = vmatpush.msra.mxu2 %v943_v57  ;;  %v832_v10 = vld [vmem:[#allocation4 + $0x9b8] sm:$0xff]  ;;  %v922_v29 = vld [vmem:[#allocation4 + $0xc88] sm:$0xff]  ;;  %v877_v7 = vld [vmem:[#allocation4 + $0xb20] sm:$0xff] }
 0x124   :  { %v1092_v2 = vpop.f32.mrf.mxu0  ;;  %1639 = vmatmul.f32.gmra.mxu3 %v2299_v23  ;;  %1650 = vmatpush.msra.mxu0 %v853_v61  ;;  %v2701_v30 = vpop.f32.mrf.mxu2  ;;  %v919_v57 = vld [vmem:[#allocation4 + $0xc70] sm:$0xff] }
 0x125   :  { %v1121_v15 = vpop.f32.mrf.mxu1  ;;  %v1093_v24 = vadd.f32 %v1092_v2, %v1064_v62  ;;  %v1179_v4 = vpop.f32.mrf.mxu3  ;;  %1610 = vmatmul.f32.gmra.mxu2 %v2397_v49  ;;  %1957 = vmatpush.msra.mxu3 %v844_v35  ;;  %v835_v49 = vld [vmem:[#allocation4 + $0x9d0] sm:$0xff]  ;;  %v820_v2 = vld [vmem:[#allocation4 + $0x958] sm:$0xff] }
 0x126   :  { %1680 = vmatpush.msra.mxu1 %v898_v43  ;;  %1711 = vmatpush.msra.mxu2 %v940_v40  ;;  %v823_v62 = vld [vmem:[#allocation4 + $0x970] sm:$0xff] }
 0x127   :  { %v1122_v14 = vadd.f32 %v1121_v15, %v1093_v24  ;;  %1651 = vmatpush.msra.mxu0 %v850_v21  ;;  %1958 = vmatpush.msra.mxu3 %v841_v53  ;;  %v826_v21 = vld [vmem:[#allocation4 + $0x988] sm:$0xff]  ;;  %v916_v15 = vld [vmem:[#allocation4 + $0xc58] sm:$0xff] }
 0x128   :  { %1681 = vmatpush.msra.mxu1 %v895_v13  ;;  %1712 = vmatpush.msra.mxu2 %v937_v34  ;;  %v811_v13 = vld [vmem:[#allocation4 + $0x910] sm:$0xff] }
 0x129   :  { %v1151_v56 = vadd.f32 %v2675_v25, %v1122_v14  ;;  %1652 = vmatpush.msra.mxu0 %v847_v48  ;;  %1581 = vmatmul.f32.gmra.mxu1 %v2395_v41  ;;  %v889_v25 = vld [vmem:[#allocation4 + $0xb80] sm:$0xff]  ;;  %v886_v41 = vld [vmem:[#allocation4 + $0xb68] sm:$0xff]  ;;  %v907_v34 = vld [vmem:[#allocation4 + $0xc10] sm:$0xff] }
 0x12a   :  { %1552 = vmatmul.f32.gmra.mxu0 %v2341_v37  ;;  %1959 = vmatpush.msra.mxu3 %v838_v58  ;;  %v829_v37 = vld [vmem:[#allocation4 + $0x9a0] sm:$0xff] }
 0x12b   :  { %v2699_v23 = vadd.f32 %v1179_v4, %v1151_v56  ;;  %1682 = vmatpush.msra.mxu1 %v892_v54  ;;  %1713 = vmatpush.msra.mxu2 %v934_v50  ;;  %v862_v56 = vld [vmem:[#allocation4 + $0xaa8] sm:$0xff]  ;;  %v859_v50 = vld [vmem:[#allocation4 + $0xa90] sm:$0xff] }
 0x12c   :  { %v1095_v5 = vpop.f32.mrf.mxu0  ;;  %1653 = vmatpush.msra.mxu0 %v844_v35  ;;  %1960 = vmatpush.msra.mxu3 %v835_v49  ;;  %v2718_v48 = vpop.f32.mrf.mxu2  ;;  %v817_v35 = vld [vmem:[#allocation4 + $0x940] sm:$0xff] }
 0x12d   :  { %v1124_v17 = vpop.f32.mrf.mxu1  ;;  %v1096_v6 = vadd.f32 %v1095_v5, %v2667_v28  ;;  %v1182_v51 = vpop.f32.mrf.mxu3  ;;  %1683 = vmatpush.msra.mxu1 %v889_v25  ;;  %1714 = vmatpush.msra.mxu2 %v931_v32  ;;  %v883_v28 = vld [vmem:[#allocation4 + $0xb50] sm:$0xff] }
 0x12e   :  { %1642 = vmatmul.f32.gmra.mxu3 %v2335_v19  ;;  %1654 = vmatpush.msra.mxu0 %v841_v53  ;;  %v880_v19 = vld [vmem:[#allocation4 + $0xb38] sm:$0xff] }
 0x12f   :  { %v1125_v61 = vadd.f32 %v1124_v17, %v1096_v6  ;;  %1613 = vmatmul.f32.gmra.mxu2 %v2430_v20  ;;  %1961 = vmatpush.msra.mxu3 %v832_v10  ;;  %v868_v53 = vld [vmem:[#allocation4 + $0xad8] sm:$0xff] }
 0x130   :  { %1684 = vmatpush.msra.mxu1 %v886_v41  ;;  %1715 = vmatpush.msra.mxu2 %v928_v44 }
 0x131   :  { %v1154_v47 = vadd.f32 %v2689_v42, %v1125_v61  ;;  %1655 = vmatpush.msra.mxu0 %v838_v58  ;;  %1962 = vmatpush.msra.mxu3 %v829_v37 }
 0x132   :  { %1685 = vmatpush.msra.mxu1 %v883_v28  ;;  %1716 = vmatpush.msra.mxu2 %v925_v12 }
 0x133   :  { %v2709_v18 = vadd.f32 %v1182_v51, %v1154_v47  ;;  %1656 = vmatpush.msra.mxu0 %v835_v49  ;;  %1584 = vmatmul.f32.gmra.mxu1 %v2428_v22  ;;  %v913_v22 = vld [vmem:[#allocation4 + $0xc40] sm:$0xff] }
 0x134   :  { %v1202_v27 = vpop.f32.mrf.mxu0  ;;  %1555 = vmatmul.f32.gmra.mxu0 %v2373_v59  ;;  %1963 = vmatpush.msra.mxu3 %v826_v21  ;;  %v871_v59 = vld [vmem:[#allocation4 + $0xaf0] sm:$0xff]  ;;  %v2731_v14 = vpop.f32.mrf.mxu2 }
 0x135   :  { %v2711_v36 = vpop.f32.mrf.mxu1  ;;  %v2714_v42 = vadd.f32 %v1202_v27, %v2683_v45  ;;  %v2716_v20 = vpop.f32.mrf.mxu3  ;;  %1686 = vmatpush.msra.mxu1 %v880_v19  ;;  %1717 = vmatpush.msra.mxu2 %v922_v29  ;;  %v874_v45 = vld [vmem:[#allocation4 + $0xb08] sm:$0xff] }
 0x136   :  { %1657 = vmatpush.msra.mxu0 %v832_v10  ;;  %1964 = vmatpush.msra.mxu3 %v823_v62 }
 0x137   :  { %1687 = vmatpush.msra.mxu1 %v877_v7  ;;  %1718 = vmatpush.msra.mxu2 %v919_v57  ;;  %v1769_v12 = vmul.f32 %v2714_v42, %v2714_v42 }
 0x138   :  { %1645 = vmatmul.f32.gmra.mxu3 %v2566_v0  ;;  %1658 = vmatpush.msra.mxu0 %v829_v37  ;;  %v814_v0 = vld [vmem:[#allocation4 + $0x928] sm:$0xff] }
 0x139   :  { %1616 = vmatmul.f32.gmra.mxu2 %v2536_v3  ;;  %1965 = vmatpush.msra.mxu3 %v820_v2  ;;  %v910_v3 = vld [vmem:[#allocation4 + $0xc28] sm:$0xff] }
 0x13a   :  { %1688 = vmatpush.msra.mxu1 %v874_v45  ;;  %1719 = vmatpush.msra.mxu2 %v916_v15  ;;  %v1261_v45 = vadd.f32 %v2701_v30, %v2711_v36 }
 0x13b   :  { %1659 = vmatpush.msra.mxu0 %v826_v21  ;;  %1966 = vmatpush.msra.mxu3 %v817_v35 }
 0x13c   :  { %v1205_v24 = vpop.f32.mrf.mxu0  ;;  %1689 = vmatpush.msra.mxu1 %v871_v59  ;;  %1720 = vmatpush.msra.mxu2 %v913_v22 }
 0x13d   :  { %v2724_v4 = vpop.f32.mrf.mxu1  ;;  %v2727_v43 = vadd.f32 %v1205_v24, %v2694_v39  ;;  %v2729_v40 = vpop.f32.mrf.mxu3  ;;  %1660 = vmatpush.msra.mxu0 %v823_v62  ;;  %1587 = vmatmul.f32.gmra.mxu1 %v2480_v38  ;;  %v865_v39 = vld [vmem:[#allocation4 + $0xac0] sm:$0xff] }
 0x13e   :  { %1558 = vmatmul.f32.gmra.mxu0 %v2423_v16  ;;  %1967 = vmatpush.msra.mxu3 %v814_v0  ;;  %v1264_v7 = vadd.f32 %v2718_v48, %v2724_v4 }
 0x13f   :  { %1690 = vmatpush.msra.mxu1 %v868_v53  ;;  %1721 = vmatpush.msra.mxu2 %v910_v3  ;;  %v1269_v49 = vpop.f32.mrf.mxu2 }
 0x140   :  { %1661 = vmatpush.msra.mxu0 %v820_v2  ;;  %1968 = vmatpush.msra.mxu3 %v811_v13  ;;  %v1293_v22 = vadd.f32 %v2729_v40, %v1264_v7 }
 0x141   :  { %1691 = vmatpush.msra.mxu1 %v865_v39  ;;  %1722 = vmatpush.msra.mxu2 %v907_v34 }
 0x142   :  { %1662 = vmatpush.msra.mxu0 %v817_v35  ;;  %1668 = vmatmul.f32.vlgmr.msra.gmra.mxu3 %v2483_v46 }
 0x143   :  { %1692 = vmatpush.msra.mxu1 %v862_v56  ;;  %1723 = vmatmul.f32.vlgmr.msra.gmra.mxu2 %v2576_v55 }
 0x144   :  { %v1208_v58 = vpop.f32.mrf.mxu0  ;;  %1663 = vmatpush.msra.mxu0 %v814_v0  ;;  %v1290_v0 = vadd.f32 %v2716_v20, %v1261_v45 }
 0x145   :  { %v1237_v54 = vpop.f32.mrf.mxu1  ;;  %v2737_v38 = vadd.f32 %v1208_v58, %v2699_v23  ;;  %v1295_v16 = vpop.f32.mrf.mxu3  ;;  %1693 = vmatpush.msra.mxu1 %v859_v50 }
 0x146   :  { %1664 = vmatpush.msra.mxu0 %v811_v13  ;;  %1694 = vmatmul.f32.vlgmr.msra.gmra.mxu1 %v2523_v63  ;;  %v1267_v35 = vadd.f32 %v2731_v14, %v1237_v54 }
 0x147   :  { %1665 = vmatmul.f32.vlgmr.msra.gmra.mxu0 %v2455_v52 }
 0x148   :  { %v1296_v53 = vadd.f32 %v1295_v16, %v1267_v35 }
 0x14a   :  { %1671 = vmatmul.f32.gmra.mxu3 %v2520_v8 }
 0x14b   :  { %1726 = vmatmul.f32.gmra.mxu2 %v2585_v11 }
 0x14c   :  { %v1211_v5 = vpop.f32.mrf.mxu0  ;;  %v2750_v55 = vpop.f32.mrf.mxu2 }
 0x14d   :  { %v1240_v17 = vpop.f32.mrf.mxu1  ;;  %v2744_v46 = vadd.f32 %v1211_v5, %v2709_v18  ;;  %v2746_v23 = vpop.f32.mrf.mxu3  ;;  %v1775_v18 = vmul.f32 %v2737_v38, %v2737_v38 }
 0x14e   :  { %1697 = vmatmul.f32.gmra.mxu1 %v2543_v9  ;;  %v1270_v30 = vadd.f32 %v1269_v49, %v1240_v17 }
 0x14f   :  { %v1778_v47 = vmul.f32 %v2744_v46, %v2744_v46 }
 0x150   :  { %v1299_v20 = vadd.f32 %v2746_v23, %v1270_v30 }
 0x151   :  { %v1783_v2 = vsel %vm60_vm0, %v1778_v47, 0.0 }
 0x152   :  { %1674 = vmatmul.f32.gmra.mxu3 %v2540_v31 }
 0x153   :  { %1729 = vmatmul.f32.gmra.mxu2 %v2594_v33  ;;  %v1772_v33 = vmul.f32 %v2727_v43, %v2727_v43 }
 0x154   :  { %v1318_v25 = vpop.f32.mrf.mxu0 }
 0x155   :  { %v1347_v63 = vpop.f32.mrf.mxu1  ;;  %v2753_v52 = vpop.f32.mrf.mxu3  ;;  %v1781_v62 = vadd.f32 %v1772_v33, %v1769_v12  ;;  %v1319_v39 = vadd.f32 %v1318_v25, %v1290_v0 }
 0x156   :  { %1700 = vmatmul.f32.gmra.mxu1 %v2552_v26  ;;  %v1379_v8 = vpop.f32.mrf.mxu2  ;;  %v1736_v26 = vadd.f32 %v2727_v43, %v2714_v42 }
 0x157   :  { %v1782_v15 = vadd.f32 %v1781_v62, %v1775_v18  ;;  %v1348_v40 = vadd.f32 %v1347_v63, %v1319_v39 }
 0x159   :  { %v1784_v24 = vadd.f32 %v1783_v2, %v1782_v15  ;;  %v1377_v25 = vadd.f32 %v2750_v55, %v1348_v40 }
 0x15b   :  { %1732 = vmatmul.f32.gmra.mxu2 %v2601_v1  ;;  %v1738_v1 = vsel %vm60_vm0, %v2744_v46, 0.0  ;;  %v1785_v4 = vrot.slane %v1784_v24, 4 }
 0x15c   :  { %v1321_v32 = vpop.f32.mrf.mxu0 }
 0x15d   :  { %v1350_v6 = vpop.f32.mrf.mxu1  ;;  %v1408_v51 = vpop.f32.mrf.mxu3  ;;  %v1322_v3 = vadd.f32 %v1321_v32, %v1293_v22  ;;  %v1786_v50 = vadd.f32 %v1785_v4, %v1784_v24 }
 0x15e   :  { %1703 = vmatmul.f32.gmra.mxu1 %v2560_v60  ;;  %v1737_v60 = vadd.f32 %v1736_v26, %v2737_v38 }
 0x15f   :  { %v1351_v14 = vadd.f32 %v1350_v6, %v1322_v3  ;;  %v1787_v33 = vrot.slane %v1786_v50, 2 }
 0x160   :  { %v1382_v61 = vpop.f32.mrf.mxu2  ;;  %v1739_v19 = vadd.f32 %v1738_v1, %v1737_v60 }
 0x161   :  { %v1380_v16 = vadd.f32 %v1379_v8, %v1351_v14  ;;  %v1788_v63 = vadd.f32 %v1787_v33, %v1786_v50 }
 0x162   :  { %v1740_v59 = vrot.slane %v1739_v19, 4 }
 0x163   :  { %v1409_v60 = vadd.f32 %v1408_v51, %v1380_v16  ;;  %v1789_v55 = vrot.slane %v1788_v63, 1 }
 0x164   :  { %v1324_v9 = vpop.f32.mrf.mxu0  ;;  %v1741_v13 = vadd.f32 %v1740_v59, %v1739_v19 }
 0x165   :  { %v1353_v11 = vpop.f32.mrf.mxu1  ;;  %v1411_v10 = vpop.f32.mrf.mxu3  ;;  %v1325_v34 = vadd.f32 %v1324_v9, %v1296_v53  ;;  %v1790_v2 = vadd.f32 %v1789_v55, %v1788_v63 }
 0x166   :  { %v1742_v54 = vrot.slane %v1741_v13, 2 }
 0x167   :  { %v1354_v5 = vadd.f32 %v1353_v11, %v1325_v34  ;;  %v1406_v11 = vadd.f32 %v2753_v52, %v1377_v25  ;;  %v1811_v59 = vmul.f32 0.04, %v1790_v2 }
 0x168   :  { %v1743_v32 = vadd.f32 %v1742_v54, %v1741_v13 }
 0x169   :  { %v1383_v9 = vadd.f32 %v1382_v61, %v1354_v5 }
 0x16a   :  { %v1744_v17 = vrot.slane %v1743_v32, 1 }
 0x16b   :  { %v1385_v37 = vpop.f32.mrf.mxu2  ;;  %v1412_v8 = vadd.f32 %v1411_v10, %v1383_v9 }
 0x16c   :  { %v1327_v31 = vpop.f32.mrf.mxu0  ;;  %v1745_v19 = vadd.f32 %v1744_v17, %v1743_v32 }
 0x16d   :  { %v1356_v41 = vpop.f32.mrf.mxu1  ;;  %v2759_v44 = vpop.f32.mrf.mxu3  ;;  %v1328_v26 = vadd.f32 %v1327_v31, %v1299_v20 }
 0x16e   :  { %v2802_v7 = vmul.f32 0.04, %v1745_v19 }
 0x16f   :  { %v1357_v6 = vadd.f32 %v1356_v41, %v1328_v26 }
 0x170   :  { %v1814_v22 = vmul.f32 %v2802_v7, %v2802_v7 }
 0x172   :  { %v1817_v39 = vsub.f32 %v1811_v59, %v1814_v22 }
 0x174   :  { %v1820_v5 = vmax.f32 %v1817_v39, 0.0 }
 0x175   :  { %v1463_v28 = vpop.f32.mrf.mxu1  ;;  %v1434_v21 = vpop.f32.mrf.mxu0 }
 0x176   :  { %v1521_v27 = vpop.f32.mrf.mxu3  ;;  %v1492_v29 = vpop.f32.mrf.mxu2  ;;  %v1435_v18 = vadd.f32 %v1434_v21, %v1406_v11  ;;  %v1823_v33 = vadd.f32 0.001, %v1820_v5 }
 0x177   :  { %v2776_v57 = vadd.f32 %v1521_v27, %v1492_v29  ;;  %v1386_v27 = vadd.f32 %v1385_v37, %v1357_v6 }
 0x178   :  { %v2797_v51 = vadd.f32 %v1463_v28, %v1435_v18  ;;  %1981 = vrsqrt.f32 %v1823_v33  ;;  %vm1832_vm15 = vweird.f32 %v1823_v33 }
 0x179   :  { %v1415_v41 = vadd.f32 %v2759_v44, %v1386_v27 }
 0x17a   :  { %v1770_v28 = vmul.f32 %v2797_v51, %v2797_v51 }
 0x17e   :  { %v1466_v48 = vpop.f32.mrf.mxu1  ;;  %v1982_v27 = vpop.eup %1981 }
 0x17f   :  { %v1437_v56 = vpop.f32.mrf.mxu0  ;;  %v2784_v58 = vpop.f32.mrf.mxu3  ;;  %vm1833_vm12 = vweird.f32 %v1982_v27 }
 0x180   :  { %v2786_v36 = vpop.f32.mrf.mxu2  ;;  %v1438_v23 = vadd.f32 %v1437_v56, %v1409_v60  ;;  %vm1834_vm1 = vmor %vm1832_vm15, %vm1833_vm12 }
 0x182   :  { %v2795_v61 = vadd.f32 %v1466_v48, %v1438_v23 }
 0x184   :  { %v1773_v52 = vmul.f32 %v2795_v61, %v2795_v61  ;;  %v1746_v15 = vadd.f32 %v2795_v61, %v2797_v51 }
 0x186   :  { %v1791_v24 = vadd.f32 %v1773_v52, %v1770_v28 }
 0x188   :  { %v1469_v1 = vpop.f32.mrf.mxu1 }
 0x189   :  { %v1440_v47 = vpop.f32.mrf.mxu0  ;;  %v2790_v49 = vpop.f32.mrf.mxu3 }
 0x18a   :  { %v2792_v12 = vpop.f32.mrf.mxu2  ;;  %v1441_v31 = vadd.f32 %v1440_v47, %v1412_v8 }
 0x18c   :  { %v2799_v29 = vadd.f32 %v1469_v1, %v1441_v31 }
 0x18e   :  { %v1776_v44 = vmul.f32 %v2799_v29, %v2799_v29  ;;  %v1747_v0 = vadd.f32 %v1746_v15, %v2799_v29 }
 0x190   :  { %v1792_v13 = vadd.f32 %v1791_v24, %v1776_v44 }
 0x192   :  { %v1472_v62 = vpop.f32.mrf.mxu1 }
 0x193   :  { %v1443_v10 = vpop.f32.mrf.mxu0  ;;  %v2806_v21 = vpop.f32.mrf.mxu3 }
 0x194   :  { %v1444_v37 = vadd.f32 %v1443_v10, %v1415_v41  ;;  %v2808_v45 = vpop.f32.mrf.mxu2 }
 0x196   :  { %v2816_v35 = vadd.f32 %v1472_v62, %v1444_v37  ;;  %v1827_v62 = vmul.f32 %v1982_v27, %v1823_v33 }
 0x198   :  { %v1748_v53 = vsel %vm60_vm0, %v2816_v35, 0.0  ;;  %v1779_v3 = vmul.f32 %v2816_v35, %v2816_v35  ;;  %v1828_v37 = vmul.f32 %v1982_v27, %v1827_v62 }
 0x199   :  { %v1749_v48 = vadd.f32 %v1748_v53, %v1747_v0 }
 0x19a   :  { %v1793_v4 = vsel %vm60_vm0, %v1779_v3, 0.0  ;;  %v1829_v15 = vmul.f32 0.5, %v1828_v37 }
 0x19b   :  { %v1750_v34 = vrot.slane %v1749_v48, 4  ;;  %v1794_v56 = vadd.f32 %v1793_v4, %v1792_v13 }
 0x19c   :  { %v2826_v30 = vpop.f32.mrf.mxu1  ;;  %v1830_v53 = vsub.f32 1.5, %v1829_v15 }
 0x19d   :  { %v1751_v14 = vadd.f32 %v1750_v34, %v1749_v48  ;;  %v1795_v54 = vrot.slane %v1794_v56, 4  ;;  %v2828_v50 = vpop.f32.mrf.mxu3  ;;  %v1550_v47 = vpop.f32.mrf.mxu0 }
 0x19e   :  { %v2830_v40 = vpop.f32.mrf.mxu2  ;;  %v1831_v4 = vmul.f32 %v1982_v27, %v1830_v53  ;;  %v1551_v34 = vadd.f32 %v1550_v47, %v2776_v57  ;;  %v1989_v47 = vld [vmem:[#allocation2] sm:$0xff] }
 0x19f   :  { %v1752_v20 = vrot.slane %v1751_v14, 2  ;;  %v1796_v16 = vadd.f32 %v1795_v54, %v1794_v56  ;;  %v1525_v56 = vadd.f32 %v2784_v58, %v2786_v36  ;;  %v1531_v36 = vadd.f32 %v2806_v21, %v2808_v45 }
 0x1a1   :  { %v1753_v32 = vadd.f32 %v1752_v20, %v1751_v14  ;;  %v1797_v26 = vrot.slane %v1796_v16, 2 }
 0x1a3   :  { %v1754_v25 = vrot.slane %v1753_v32, 1  ;;  %v1798_v9 = vadd.f32 %v1797_v26, %v1796_v16  ;;  %v1528_v16 = vadd.f32 %v2790_v49, %v2792_v12 }
 0x1a5   :  { %v1755_v1 = vadd.f32 %v1754_v25, %v1753_v32  ;;  %v1799_v60 = vrot.slane %v1798_v9, 1  ;;  %v1835_v32 = vsel %vm1834_vm1, %v1982_v27, %v1831_v4 }
 0x1a6   :  { %v1582_v17 = vpop.f32.mrf.mxu1 }
 0x1a7   :  { %v1767_v6 = vmul.f32 0.04, %v1755_v1  ;;  %v1800_v63 = vadd.f32 %v1799_v60, %v1798_v9  ;;  %v2832_v11 = vpop.f32.mrf.mxu3  ;;  %v1553_v41 = vpop.f32.mrf.mxu0  ;;  %v1580_v9 = vadd.f32 %v2826_v30, %v1551_v34 }
 0x1a8   :  { %v1611_v23 = vpop.f32.mrf.mxu2  ;;  %v1554_v26 = vadd.f32 %v1553_v41, %v1525_v56 }
 0x1a9   :  { %v1812_v8 = vmul.f32 0.04, %v1800_v63  ;;  %v1815_v18 = vmul.f32 %v1767_v6, %v1767_v6 }
 0x1aa   :  { %v1583_v63 = vadd.f32 %v1582_v17, %v1554_v26 }
 0x1ab   :  { %v1818_v31 = vsub.f32 %v1812_v8, %v1815_v18  ;;  %v1609_v8 = vadd.f32 %v2830_v40, %v1580_v9 }
 0x1ac   :  { %v1612_v30 = vadd.f32 %v1611_v23, %v1583_v63 }
 0x1ad   :  { %v1821_v19 = vmax.f32 %v1818_v31, 0.0  ;;  %v1638_v41 = vadd.f32 %v2828_v50, %v1609_v8 }
 0x1af   :  { %v1824_v55 = vadd.f32 0.001, %v1821_v19 }
 0x1b0   :  { %v1585_v2 = vpop.f32.mrf.mxu1 }
 0x1b1   :  { %1983 = vrsqrt.f32 %v1824_v55  ;;  %v2834_v52 = vpop.f32.mrf.mxu3  ;;  %v1556_v59 = vpop.f32.mrf.mxu0  ;;  %vm1842_vm13 = vweird.f32 %v1824_v55 }
 0x1b2   :  { %v1614_v10 = vpop.f32.mrf.mxu2  ;;  %v1557_v33 = vadd.f32 %v1556_v59, %v1528_v16  ;;  %v1641_v59 = vadd.f32 %v2832_v11, %v1612_v30 }
 0x1b4   :  { %v1586_v12 = vadd.f32 %v1585_v2, %v1557_v33 }
 0x1b7   :  { %v1984_v28 = vpop.eup %1983 }
 0x1b8   :  { %v1837_v44 = vmul.f32 %v1984_v28, %v1824_v55  ;;  %vm1843_vm11 = vweird.f32 %v1984_v28 }
 0x1b9   :  { %vm1844_vm14 = vmor %vm1842_vm13, %vm1843_vm11 }
 0x1ba   :  { %v1838_v22 = vmul.f32 %v1984_v28, %v1837_v44  ;;  %v1588_v24 = vpop.f32.mrf.mxu1  ;;  %v1615_v44 = vadd.f32 %v1614_v10, %v1586_v12 }
 0x1bb   :  { %v2836_v0 = vpop.f32.mrf.mxu3  ;;  %v1559_v5 = vpop.f32.mrf.mxu0 }
 0x1bc   :  { %v1839_v3 = vmul.f32 0.5, %v1838_v22  ;;  %v1617_v13 = vpop.f32.mrf.mxu2  ;;  %v1560_v31 = vadd.f32 %v1559_v5, %v1531_v36  ;;  %v1644_v50 = vadd.f32 %v2834_v52, %v1615_v44 }
 0x1be   :  { %v1840_v48 = vsub.f32 1.5, %v1839_v3  ;;  %v1589_v21 = vadd.f32 %v1588_v24, %v1560_v31 }
 0x1c0   :  { %v1841_v39 = vmul.f32 %v1984_v28, %v1840_v48  ;;  %v1618_v23 = vadd.f32 %v1617_v13, %v1589_v21 }
 0x1c2   :  { %v1845_v14 = vsel %vm1844_vm14, %v1984_v28, %v1841_v39 }
 0x1c3   :  { %v1859_v54 = vrot.slane %v1845_v14, 4  ;;  %v1695_v20 = vpop.f32.mrf.mxu1 }
 0x1c4   :  { %v1666_v62 = vpop.f32.mrf.mxu0 }
 0x1c5   :  { %v1860_v25 = vsel %vm182_vm8, %v1835_v32, %v1859_v54  ;;  %v1669_v1 = vpop.f32.mrf.mxu3  ;;  %v1667_v2 = vadd.f32 %v1666_v62, %v1638_v41 }
 0x1c6   :  { %v1861_v57 = vrot.slane %v1860_v25, 6  ;;  %v1724_v60 = vpop.f32.mrf.mxu2  ;;  %v1670_v53 = vadd.f32 %v1669_v1, %v1641_v59 }
 0x1c8   :  { %v1865_v58 = vmul.f32 %v1989_v47, %v1861_v57 }
 0x1ca   :  { %v1869_v18 = vperm.slane %v1865_v58, 2  ;;  %v1870_v49 = vperm.slane %v1865_v58, 6 }
 0x1cb   :  { %v1698_v27 = vpop.f32.mrf.mxu1 }
 0x1cc   :  { %v1876_v19 = vmul.f32 %v1870_v49, %v1767_v6  ;;  %v1890_v55 = vperm.slane %v1870_v49, 2  ;;  %v1875_v28 = vmul.f32 %v1869_v18, %v2802_v7  ;;  %v1889_v22 = vperm.slane %v1869_v18, 2 }
 0x1cd   :  { %v1672_v37 = vpop.f32.mrf.mxu3  ;;  %v1696_v7 = vadd.f32 %v1695_v20, %v1667_v2  ;;  %v1699_v4 = vadd.f32 %v1698_v27, %v1670_v53 }
 0x1ce   :  { %v1881_v15 = vrot.slane %v1876_v19, 4  ;;  %v1727_v45 = vpop.f32.mrf.mxu2  ;;  %v1902_v17 = vmul.f32 %v1890_v55, %v2816_v35  ;;  %v1673_v10 = vadd.f32 %v1672_v37, %v1644_v50  ;;  %v1892_v34 = vmul.f32 %v1889_v22, %v2714_v42 }
 0x1cf   :  { %v1647_v35 = vadd.f32 %v2836_v0, %v1618_v23  ;;  %v1893_v11 = vmul.f32 %v1890_v55, %v2797_v51  ;;  %v1895_v13 = vmul.f32 %v1889_v22, %v2727_v43  ;;  %v1896_v16 = vmul.f32 %v1890_v55, %v2795_v61 }
 0x1d0   :  { %v1882_v40 = vsel %vm182_vm8, %v1875_v28, %v1881_v15  ;;  %v1898_v20 = vmul.f32 %v1889_v22, %v2737_v38  ;;  %v2860_v32 = vadd.f32 %v1724_v60, %v1696_v7  ;;  %v2862_v26 = vadd.f32 %v1727_v45, %v1699_v4 }
 0x1d1   :  { %v1883_v6 = vrot.slane %v1882_v40, 5  ;;  %v1899_v42 = vmul.f32 %v1890_v55, %v2799_v29  ;;  %v1901_v33 = vmul.f32 %v1889_v22, %v2744_v46 }
 0x1d2   :  { %v1774_v29 = vmul.f32 %v2862_v26, %v2862_v26  ;;  %v1771_v46 = vmul.f32 %v2860_v32, %v2860_v32  ;;  %v1756_v36 = vadd.f32 %v2862_v26, %v2860_v32 }
 0x1d3   :  { %v1887_v3 = vsub.f32 %v1989_v47, %v1883_v6  ;;  %v1701_v48 = vpop.f32.mrf.mxu1 }
 0x1d4   :  { %v1702_v56 = vadd.f32 %v1701_v48, %v1673_v10  ;;  %v1801_v49 = vadd.f32 %v1774_v29, %v1771_v46 }
 0x1d5   :  { %v1906_v24 = vperm.slane %v1887_v3, 3  ;;  %v1907_v39 = vperm.slane %v1887_v3, 7  ;;  %v1675_v52 = vpop.f32.mrf.mxu3 }
 0x1d6   :  { %v1730_v14 = vpop.f32.mrf.mxu2  ;;  %v1676_v57 = vadd.f32 %v1675_v52, %v1647_v35 }
 0x1d7   :  { %v1912_v54 = vperm.slane %v1906_v24, 3  ;;  %v1913_v5 = vperm.slane %v1907_v39, 3  ;;  %v2865_v43 = vadd.f32 %v1730_v14, %v1702_v56  ;;  %v1990_v14 = vld [vmem:[#allocation2 + $0x8] sm:$0xf] }
 0x1d9   :  { %v1915_v25 = vadd.f32 %v1912_v54, %v1892_v34  ;;  %v1916_v0 = vadd.f32 %v1913_v5, %v1893_v11  ;;  %v1918_v9 = vadd.f32 %v1912_v54, %v1895_v13  ;;  %v1919_v1 = vadd.f32 %v1913_v5, %v1896_v16 }
 0x1da   :  { %v1925_v51 = vadd.f32 %v1913_v5, %v1902_v17  ;;  %v1921_v47 = vadd.f32 %v1912_v54, %v1898_v20  ;;  %v1922_v61 = vadd.f32 %v1913_v5, %v1899_v42  ;;  %v1924_v58 = vadd.f32 %v1912_v54, %v1901_v33 }
 0x1db   :  { %1927 = vst [vmem:[%s2921_s3] sm:$0xff] %v1915_v25  ;;  %v1704_v38 = vpop.f32.mrf.mxu1  ;;  %v1777_v63 = vmul.f32 %v2865_v43, %v2865_v43  ;;  %v1757_v12 = vadd.f32 %v1756_v36, %v2865_v43 }
 0x1dc   :  { %1928 = vst [vmem:[%s2921_s3 + $0x8] sm:$0xff] %v1916_v0  ;;  %v1705_v60 = vadd.f32 %v1704_v38, %v1676_v57 }
 0x1dd   :  { %1930 = vst [vmem:[%s2921_s3 + $0x18] sm:$0xff] %v1918_v9  ;;  %v1802_v19 = vadd.f32 %v1801_v49, %v1777_v63 }
 0x1de   :  { %1931 = vst [vmem:[%s2921_s3 + $0x20] sm:$0xff] %v1919_v1  ;;  %v1733_v8 = vpop.f32.mrf.mxu2 }
 0x1df   :  { %1933 = vst [vmem:[%s2921_s3 + $0x30] sm:$0xff] %v1921_v47  ;;  %v1734_v18 = vadd.f32 %v1733_v8, %v1705_v60 }
 0x1e0   :  { %1934 = vst [vmem:[%s2921_s3 + $0x38] sm:$0xff] %v1922_v61 }
 0x1e1   :  { %1936 = vst [vmem:[%s2921_s3 + $0x48] sm:$0x1] %v1924_v58  ;;  %v1758_v31 = vsel %vm60_vm0, %v1734_v18, 0.0  ;;  %v1780_v27 = vmul.f32 %v1734_v18, %v1734_v18 }
 0x1e2   :  { %1937 = vst [vmem:[%s2921_s3 + $0x50] sm:$0x1] %v1925_v51  ;;  %v1759_v55 = vadd.f32 %v1758_v31, %v1757_v12 }
 0x1e3   :  { %v1803_v30 = vsel %vm60_vm0, %v1780_v27, 0.0 }
 0x1e4   :  { %v1760_v41 = vrot.slane %v1759_v55, 4  ;;  %v1804_v62 = vadd.f32 %v1803_v30, %v1802_v19 }
 0x1e6   :  { %v1761_v37 = vadd.f32 %v1760_v41, %v1759_v55  ;;  %v1805_v28 = vrot.slane %v1804_v62, 4 }
 0x1e8   :  { %v1762_v15 = vrot.slane %v1761_v37, 2  ;;  %v1806_v44 = vadd.f32 %v1805_v28, %v1804_v62 }
 0x1ea   :  { %v1763_v21 = vadd.f32 %v1762_v15, %v1761_v37  ;;  %v1807_v45 = vrot.slane %v1806_v44, 2 }
 0x1ec   :  { %v1764_v40 = vrot.slane %v1763_v21, 1  ;;  %v1808_v17 = vadd.f32 %v1807_v45, %v1806_v44 }
 0x1ee   :  { %v1765_v2 = vadd.f32 %v1764_v40, %v1763_v21  ;;  %v1809_v59 = vrot.slane %v1808_v17, 1 }
 0x1f0   :  { %v1768_v6 = vmul.f32 0.04, %v1765_v2  ;;  %v1810_v22 = vadd.f32 %v1809_v59, %v1808_v17 }
 0x1f2   :  { %v1813_v23 = vmul.f32 0.04, %v1810_v22  ;;  %v1816_v53 = vmul.f32 %v1768_v6, %v1768_v6 }
 0x1f4   :  { %v1819_v50 = vsub.f32 %v1813_v23, %v1816_v53 }
 0x1f6   :  { %v1822_v3 = vmax.f32 %v1819_v50, 0.0 }
 0x1f8   :  { %v1825_v48 = vadd.f32 0.001, %v1822_v3 }
 0x1fa   :  { %1985 = vrsqrt.f32 %v1825_v48  ;;  %vm1852_vm8 = vweird.f32 %v1825_v48 }
 0x200   :  { %v1986_v7 = vpop.eup %1985 }
 0x201   :  { %v1847_v4 = vmul.f32 %v1986_v7, %v1825_v48  ;;  %vm1853_vm0 = vweird.f32 %v1986_v7 }
 0x202   :  { %vm1854_vm2 = vmor %vm1852_vm8, %vm1853_vm0 }
 0x203   :  { %v1848_v10 = vmul.f32 %v1986_v7, %v1847_v4 }
 0x205   :  { %v1849_v24 = vmul.f32 0.5, %v1848_v10 }
 0x207   :  { %v1850_v39 = vsub.f32 1.5, %v1849_v24 }
 0x209   :  { %v1851_v34 = vmul.f32 %v1986_v7, %v1850_v39 }
 0x20b   :  { %v1855_v56 = vsel %vm1854_vm2, %v1986_v7, %v1851_v34 }
 0x20c   :  { %v1862_v35 = vrot.slane %v1855_v56, 6 }
 0x20e   :  { %v1866_v11 = vmul.f32 %v1990_v14, %v1862_v35 }
 0x210   :  { %v1871_v13 = vperm.slane %v1866_v11, 2 }
 0x212   :  { %v1877_v54 = vmul.f32 %v1871_v13, %v1768_v6  ;;  %v1891_v16 = vperm.slane %v1871_v13, 2 }
 0x214   :  { %v1884_v5 = vrot.slane %v1877_v54, 5  ;;  %v1894_v42 = vmul.f32 %v1891_v16, %v2860_v32  ;;  %v1897_v25 = vmul.f32 %v1891_v16, %v2862_v26  ;;  %v1900_v0 = vmul.f32 %v1891_v16, %v2865_v43 }
 0x215   :  { %v1903_v1 = vmul.f32 %v1891_v16, %v1734_v18 }
 0x216   :  { %v1888_v52 = vsub.f32 %v1990_v14, %v1884_v5 }
 0x218   :  { %v1908_v20 = vperm.slane %v1888_v52, 3 }
 0x21a   :  { %v1914_v9 = vperm.slane %v1908_v20, 3 }
 0x21c   :  { %v1917_v51 = vadd.f32 %v1914_v9, %v1894_v42  ;;  %v1920_v57 = vadd.f32 %v1914_v9, %v1897_v25  ;;  %v1923_v33 = vadd.f32 %v1914_v9, %v1900_v0  ;;  %v1926_v47 = vadd.f32 %v1914_v9, %v1903_v1 }
 0x21e   :  { %1929 = vst [vmem:[%s2921_s3 + $0x10] sm:$0xff] %v1917_v51 }
 0x21f   :  { %1932 = vst [vmem:[%s2921_s3 + $0x28] sm:$0xff] %v1920_v57 }
 0x220   :  { %1935 = vst [vmem:[%s2921_s3 + $0x40] sm:$0xff] %v1923_v33 }
 0x221   :  { %1938 = vst [vmem:[%s2921_s3 + $0x58] sm:$0x1] %v1926_v47 }
 0x222   :  { %1943 = vsyncpa [#allocation3], 1 }
 0x223   :  { %1944 = vsyncpa [#allocation5], 1 }

</bundles_post_ra>
